<compile_context>
chip_gen: v6e
topology: v6e:2x2x1
jax: 0.10.0
libtpu: 0.0.40
codegen_flags: <defaults>
</compile_context>

<pallas_src>
import collections
import functools
import math

import jax
import jax.numpy as jnp
from jax import lax
from jax.experimental import pallas as pl
from jax.experimental.pallas import tpu as pltpu

BN_EPS = 1e-5

# Tile caps — sized so double-buffered inputs/outputs stay well under the
# 32 MiB default scoped VMEM on every generation (v5e/v6e 128 MiB, v7x 64 MiB).
TM_CAP = 512
TN_CAP = 512
TK_CAP = 512


def _ceil_to(x, m):
    return ((x + m - 1) // m) * m


# ----------------------------------------------------------------------------
# Pallas kernel: tiled matmul + bias (+ residual) (+ ReLU)
# ----------------------------------------------------------------------------
def _mm_body(x_ref, w_ref, b_ref, r_ref, o_ref, acc_ref, apply_relu):
    k = pl.program_id(2)

    @pl.when(k == 0)
    def _():
        acc_ref[...] = jnp.zeros_like(acc_ref)

    acc_ref[...] += jnp.dot(x_ref[...], w_ref[...],
                            preferred_element_type=jnp.float32)

    @pl.when(k == pl.num_programs(2) - 1)
    def _():
        y = acc_ref[...] + b_ref[...]
        if r_ref is not None:
            y = y + r_ref[...]
        if apply_relu:
            y = jnp.maximum(y, 0.0)
        o_ref[...] = y.astype(o_ref.dtype)


def _make_mm_kernel(apply_relu, has_res):
    if has_res:
        def kernel(x_ref, w_ref, b_ref, r_ref, o_ref, acc_ref):
            _mm_body(x_ref, w_ref, b_ref, r_ref, o_ref, acc_ref, apply_relu)
    else:
        def kernel(x_ref, w_ref, b_ref, o_ref, acc_ref):
            _mm_body(x_ref, w_ref, b_ref, None, o_ref, acc_ref, apply_relu)
    return kernel


def _fused_matmul(patches, w, b, residual, relu):
    """patches: (Mp,Kp) bf16, w: (Kp,Cp) bf16, b: (1,Cp) f32, residual (Mp,Cp) f32."""
    Mp, Kp = patches.shape
    _, Cp = w.shape
    TM = min(TM_CAP, Mp)
    TK = min(TK_CAP, Kp)
    TN = min(TN_CAP, Cp)
    grid = (Mp // TM, Cp // TN, Kp // TK)

    in_specs = [
        pl.BlockSpec((TM, TK), lambda i, j, k: (i, k)),   # patches
        pl.BlockSpec((TK, TN), lambda i, j, k: (k, j)),   # weight (M-resident)
        pl.BlockSpec((1, TN), lambda i, j, k: (0, j)),    # bias   (M-resident)
    ]
    args = [patches, w, b]
    has_res = residual is not None
    if has_res:
        in_specs.append(pl.BlockSpec((TM, TN), lambda i, j, k: (i, j)))
        args.append(residual)

    return pl.pallas_call(
        _make_mm_kernel(bool(relu), has_res),
        out_shape=jax.ShapeDtypeStruct((Mp, Cp), jnp.float32),
        grid=grid,
        in_specs=in_specs,
        out_specs=pl.BlockSpec((TM, TN), lambda i, j, k: (i, j)),
        scratch_shapes=[pltpu.VMEM((TM, TN), jnp.float32)],
        compiler_params=pltpu.CompilerParams(
            dimension_semantics=("parallel", "parallel", "arbitrary")),
    )(*args)


# ----------------------------------------------------------------------------
# Plain-JAX glue: im2col, pooling
# ----------------------------------------------------------------------------
def _im2col(x, kh, kw, stride, padding, dilation):
    """x: (N,H,W,C) -> patches (N*Ho*Wo, kh*kw*C), K ordered (kh, kw, C)."""
    N, H, W, C = x.shape
    if padding > 0:
        x = jnp.pad(x, ((0, 0), (padding, padding), (padding, padding), (0, 0)))
    Hp, Wp = H + 2 * padding, W + 2 * padding
    Ho = (Hp - dilation * (kh - 1) - 1) // stride + 1
    Wo = (Wp - dilation * (kw - 1) - 1) // stride + 1
    cols = []
    for i in range(kh):
        for j in range(kw):
            r0, c0 = i * dilation, j * dilation
            cols.append(
                x[:, r0:r0 + stride * (Ho - 1) + 1:stride,
                     c0:c0 + stride * (Wo - 1) + 1:stride, :]
            )
    patches = jnp.concatenate(cols, axis=-1)
    return patches.reshape(N * Ho * Wo, kh * kw * C), (N, Ho, Wo)


def conv_bn(x, wb, out_ch, kh=1, kw=1, stride=1, padding=0, dilation=1,
            relu=False, residual=None):
    """Conv (no bias) + eval-BN (scale folded into w) [+ residual] [+ ReLU]."""
    w, b = wb
    x_bf = x.astype(jnp.bfloat16)          # bf16 MXU inputs, f32 accumulation
    if kh == 1 and kw == 1 and stride == 1 and padding == 0:
        N, H, W, C = x.shape
        patches, dims = x_bf.reshape(N * H * W, C), (N, H, W)
    else:
        # TODO(synk): gather the 3x3 taps inside the kernel (pl.ANY + manual
        # DMA over shifted windows) to avoid the im2col HBM round-trip.
        patches, dims = _im2col(x_bf, kh, kw, stride, padding, dilation)

    M, K = patches.shape
    Kp, Cp = w.shape                        # already padded at construction
    TM_sel = min(TM_CAP, _ceil_to(M, 16))
    Mp = _ceil_to(M, TM_sel)
    patches = jnp.pad(patches, ((0, Mp - M), (0, Kp - K)))

    res = None
    if residual is not None:
        Cr = residual.shape[-1]
        res = residual.reshape(-1, Cr).astype(jnp.float32)
        res = jnp.pad(res, ((0, Mp - M), (0, Cp - Cr)))

    out = _fused_matmul(patches, w, b, res, relu)
    N, Ho, Wo = dims
    return out[:M, :out_ch].reshape(N, Ho, Wo, out_ch)


def maxpool_3x3_s2_p1(x):
    return lax.reduce_window(
        x, -jnp.inf, lax.max, (1, 3, 3, 1), (1, 2, 2, 1),
        ((0, 0), (1, 1), (1, 1), (0, 0)))


def avgpool_3x3_p1(x, stride):
    # nn.AvgPool2d(3, stride, padding=1), count_include_pad=True -> /9
    s = lax.reduce_window(
        x, 0.0, lax.add, (1, 3, 3, 1), (1, stride, stride, 1),
        ((0, 0), (1, 1), (1, 1), (0, 0)))
    return s / 9.0


def avgpool_down(x, stride):
    # nn.AvgPool2d(kernel=stride, stride=stride, ceil_mode=True,
    #              count_include_pad=False); spatial dims are multiples of
    # stride here so ceil_mode / count_include_pad are no-ops.
    if stride == 1:
        return x
    s = lax.reduce_window(
        x, 0.0, lax.add, (1, stride, stride, 1), (1, stride, stride, 1), "VALID")
    return s / float(stride * stride)


# ----------------------------------------------------------------------------
# Deterministic parameter construction (BN folded, padded, bf16)
# ----------------------------------------------------------------------------
class KeyGen:
    def __init__(self, key):
        self._key = key

    def __call__(self):
        self._key, sub = jax.random.split(self._key)
        return sub


def make_conv_bn_params(kg, kh, kw, cin, cout):
    # kaiming_normal_(mode='fan_out', nonlinearity='relu')
    std = math.sqrt(2.0 / (kh * kw * cout))
    w = jax.random.normal(kg(), (kh * kw * cin, cout), jnp.float32) * std
    # eval BN: gamma=1, beta=0, mean=0, var=1  ->  scale=1/sqrt(1+eps), bias=0
    scale = 1.0 / math.sqrt(1.0 + BN_EPS)
    w = w * scale
    bias = jnp.zeros((cout,), jnp.float32)
    K, C = kh * kw * cin, cout
    Kp = _ceil_to(K, min(TK_CAP, _ceil_to(K, 128)))
    Cp = _ceil_to(C, min(TN_CAP, _ceil_to(C, 128)))
    wp = jnp.zeros((Kp, Cp), jnp.float32).at[:K, :C].set(w).astype(jnp.bfloat16)
    bp = jnp.zeros((1, Cp), jnp.float32).at[0, :C].set(bias)
    return (wp, bp)


BlockCfg = collections.namedtuple(
    "BlockCfg", "stride stype width scale nums dilation has_down out1 out3")


def make_block(kg, inplanes, planes, stride, stype,
               baseWidth=26, scale=4, dilation=1):
    width = int(math.floor(planes * (baseWidth / 64.0)))
    nums = 1 if scale == 1 else scale - 1
    has_down = (stride != 1 or inplanes != planes * 4)
    p = {
        "conv1": make_conv_bn_params(kg, 1, 1, inplanes, width * scale),
        "convs": tuple(make_conv_bn_params(kg, 3, 3, width, width)
                       for _ in range(nums)),
        "conv3": make_conv_bn_params(kg, 1, 1, width * scale, planes * 4),
    }
    if has_down:
        p["down"] = make_conv_bn_params(kg, 1, 1, inplanes, planes * 4)
    cfg = BlockCfg(stride, stype, width, scale, nums, dilation, has_down,
                   width * scale, planes * 4)
    return p, cfg


def make_layer(kg, inplanes, planes, blocks, stride=1,
               baseWidth=26, scale=4, dilation=1):
    ps, cfgs = [], []
    p, c = make_block(kg, inplanes, planes, stride, "stage",
                      baseWidth, scale, dilation)
    ps.append(p); cfgs.append(c)
    inplanes = planes * 4
    for _ in range(1, blocks):
        p, c = make_block(kg, inplanes, planes, 1, "normal",
                          baseWidth, scale, dilation)
        ps.append(p); cfgs.append(c)
    return ps, tuple(cfgs), inplanes


def make_res2net_params(seed=0):
    kg = KeyGen(jax.random.PRNGKey(seed))
    params, cfgs = {}, {}
    # deep stem: conv(3->32,s2)+BN+ReLU, conv(32->32)+BN+ReLU, conv(32->64);
    # the outer self.bn1 + relu is fused into the third conv below.
    params["stem"] = (
        make_conv_bn_params(kg, 3, 3, 3, 32),
        make_conv_bn_params(kg, 3, 3, 32, 32),
        make_conv_bn_params(kg, 3, 3, 32, 64),
    )
    inplanes = 64
    params["layer1"], cfgs["layer1"], inplanes = make_layer(kg, inplanes, 64, 3, stride=1)
    params["layer2"], cfgs["layer2"], inplanes = make_layer(kg, inplanes, 128, 4, stride=2)
    params["layer3"], cfgs["layer3"], inplanes = make_layer(kg, inplanes, 256, 23, stride=2)
    return params, cfgs


# ----------------------------------------------------------------------------
# Forward pass
# ----------------------------------------------------------------------------
def bottle2neck_forward(x, p, cfg):
    width, scale, nums = cfg.width, cfg.scale, cfg.nums
    stride, stype, dil = cfg.stride, cfg.stype, cfg.dilation

    out = conv_bn(x, p["conv1"], cfg.out1, 1, 1, relu=True)
    spx = [out[..., i * width:(i + 1) * width] for i in range(scale)]

    pieces = []
    sp = None
    for i in range(nums):
        if i == 0 or stype == "stage":
            sp = spx[i]
        else:
            sp = sp + spx[i]
        sp = conv_bn(sp, p["convs"][i], width, 3, 3,
                     stride=stride, padding=dil, dilation=dil, relu=True)
        pieces.append(sp)

    if scale != 1 and stype == "normal":
        pieces.append(spx[nums])
    elif scale != 1 and stype == "stage":
        pieces.append(avgpool_3x3_p1(spx[nums], stride))

    cat = jnp.concatenate(pieces, axis=-1)

    if cfg.has_down:
        residual = avgpool_down(x, stride)
        residual = conv_bn(residual, p["down"], cfg.out3, 1, 1, relu=False)
    else:
        residual = x

    # conv3 + bn3 + residual add + ReLU fused in one Pallas kernel
    return conv_bn(cat, p["conv3"], cfg.out3, 1, 1, relu=True, residual=residual)


@functools.partial(jax.jit, static_argnums=(2,))
def _block_jit(x, p, cfg):
    return bottle2neck_forward(x, p, cfg)


@jax.jit
def _stem_jit(x_nchw, stem_p):
    x = jnp.transpose(x_nchw, (0, 2, 3, 1)).astype(jnp.float32)  # NCHW -> NHWC
    (w0, b0), (w1, b1), (w2, b2) = stem_p
    x = conv_bn(x, (w0, b0), 32, 3, 3, stride=2, padding=1, relu=True)
    x = conv_bn(x, (w1, b1), 32, 3, 3, stride=1, padding=1, relu=True)
    x = conv_bn(x, (w2, b2), 64, 3, 3, stride=1, padding=1, relu=True)  # +bn1+relu
    return maxpool_3x3_s2_p1(x)


def res2net_forward(x_nchw, params, cfgs):
    x = _stem_jit(x_nchw, params["stem"])
    for layer in ("layer1", "layer2", "layer3"):
        for p, cfg in zip(params[layer], cfgs[layer]):
            x = _block_jit(x, p, cfg)
    # back to NCHW, tuple like the reference `return tuple([x])`
    return (jnp.transpose(x, (0, 3, 1, 2)),)


# ----------------------------------------------------------------------------
if __name__ == "__main__":
    params, cfgs = make_res2net_params(seed=0)
    x = jax.random.normal(jax.random.PRNGKey(0), (2, 3, 32, 32), jnp.float32)

    (out,) = res2net_forward(x, params, cfgs)
    out = jax.block_until_ready(out)

    # stem s2 -> 16, maxpool s2 -> 8, layer2 s2 -> 4, layer3 s2 -> 2; C = 256*4
    assert out.shape == (2, 1024, 2, 2), out.shape
    assert bool(jnp.all(jnp.isfinite(out)))
    print("KERNEL_OK")
</pallas_src>

<mosaic_0001>
module attributes {stable_mosaic.version = 11 : i64} {
  func.func @kernel(%arg0: i32, %arg1: i32, %arg2: i32, %arg3: memref<512x128xbf16, #tpu.memory_space<vmem>>, %arg4: memref<128x128xbf16, #tpu.memory_space<vmem>>, %arg5: memref<1x128xf32, #tpu.memory_space<vmem>>, %arg6: memref<512x128xf32, #tpu.memory_space<vmem>>, %arg7: memref<512x128xf32, #tpu.memory_space<vmem>>) attributes {dimension_semantics = [#tpu.dimension_semantics<parallel>, #tpu.dimension_semantics<parallel>, #tpu.dimension_semantics<arbitrary>], iteration_bounds = array<i64: 1, 1, 1>, scalar_prefetch = 0 : i64, scratch_operands = 1 : i64, tpu.core_type = #tpu.core_type<tc>, window_params = [{transform_indices = @transform_0, window_bounds = array<i64: 512, 128>}, {transform_indices = @transform_1, window_bounds = array<i64: 128, 128>}, {transform_indices = @transform_2, window_bounds = array<i64: 1, 128>}, {transform_indices = @transform_3, window_bounds = array<i64: 512, 128>}]} {
    %c0_i32 = arith.constant 0 : i32
    %0 = arith.cmpi eq, %arg2, %c0_i32 : i32
    %1 = arith.extui %0 : i1 to i32
    %c0_i32_0 = arith.constant 0 : i32
    %2 = arith.cmpi ne, %1, %c0_i32_0 : i32
    scf.if %2 {
      %cst_10 = arith.constant 0.000000e+00 : f32
      %12 = vector.broadcast %cst_10 : f32 to vector<512x128xf32>
      %c0_11 = arith.constant 0 : index
      %c0_12 = arith.constant 0 : index
      %13 = vector.load %arg7[%c0_11, %c0_12] : memref<512x128xf32, #tpu.memory_space<vmem>>, vector<512x128xf32>
      tpu.vector_store %arg7[%c0_11, %c0_12], %12 {strides = array<i32>} : memref<512x128xf32, #tpu.memory_space<vmem>>, vector<512x128xf32>,
    } else {
    }
    %c0 = arith.constant 0 : index
    %c0_1 = arith.constant 0 : index
    %3 = vector.load %arg7[%c0, %c0_1] : memref<512x128xf32, #tpu.memory_space<vmem>>, vector<512x128xf32>
    %c0_2 = arith.constant 0 : index
    %c0_3 = arith.constant 0 : index
    %4 = vector.load %arg3[%c0_2, %c0_3] : memref<512x128xbf16, #tpu.memory_space<vmem>>, vector<512x128xbf16>
    %c0_4 = arith.constant 0 : index
    %c0_5 = arith.constant 0 : index
    %5 = vector.load %arg4[%c0_4, %c0_5] : memref<128x128xbf16, #tpu.memory_space<vmem>>, vector<128x128xbf16>
    %cst = arith.constant dense<0.000000e+00> : vector<512x128xf32>
    %6 = tpu.matmul %4, %5, %cst {dimension_numbers = #tpu.dot_dimension_numbers<[1], [0], [0], [1], [0, 0, 1, 1], [], []>} : vector<512x128xbf16>, vector<128x128xbf16>, vector<512x128xf32> -> vector<512x128xf32>
    %7 = arith.addf %3, %6 : vector<512x128xf32>
    %c0_6 = arith.constant 0 : index
    %c0_7 = arith.constant 0 : index
    %8 = vector.load %arg7[%c0_6, %c0_7] : memref<512x128xf32, #tpu.memory_space<vmem>>, vector<512x128xf32>
    tpu.vector_store %arg7[%c0_6, %c0_7], %7 {strides = array<i32>} : memref<512x128xf32, #tpu.memory_space<vmem>>, vector<512x128xf32>,
    %c0_i32_8 = arith.constant 0 : i32
    %9 = arith.cmpi eq, %arg2, %c0_i32_8 : i32
    %10 = arith.extui %9 : i1 to i32
    %c0_i32_9 = arith.constant 0 : i32
    %11 = arith.cmpi ne, %10, %c0_i32_9 : i32
    scf.if %11 {
      %c0_10 = arith.constant 0 : index
      %c0_11 = arith.constant 0 : index
      %12 = vector.load %arg7[%c0_10, %c0_11] : memref<512x128xf32, #tpu.memory_space<vmem>>, vector<512x128xf32>
      %c0_12 = arith.constant 0 : index
      %c0_13 = arith.constant 0 : index
      %13 = vector.load %arg5[%c0_12, %c0_13] : memref<1x128xf32, #tpu.memory_space<vmem>>, vector<1x128xf32>
      %14 = vector.broadcast %13 : vector<1x128xf32> to vector<512x128xf32>
      %15 = arith.addf %12, %14 : vector<512x128xf32>
      %cst_14 = arith.constant 0.000000e+00 : f32
      %16 = vector.broadcast %cst_14 : f32 to vector<512x128xf32>
      %17 = arith.maximumf %15, %16 : vector<512x128xf32>
      %c0_15 = arith.constant 0 : index
      %c0_16 = arith.constant 0 : index
      %18 = vector.load %arg6[%c0_15, %c0_16] : memref<512x128xf32, #tpu.memory_space<vmem>>, vector<512x128xf32>
      tpu.vector_store %arg6[%c0_15, %c0_16], %17 {strides = array<i32>} : memref<512x128xf32, #tpu.memory_space<vmem>>, vector<512x128xf32>,
    } else {
    }
    return
  }
  func.func @transform_0(%arg0: i32, %arg1: i32, %arg2: i32) -> (i32, i32) {
    %c0_i32 = arith.constant 0 : i32
    return %arg0, %arg2 : i32, i32
  }
  func.func @transform_1(%arg0: i32, %arg1: i32, %arg2: i32) -> (i32, i32) {
    %c0_i32 = arith.constant 0 : i32
    return %arg2, %arg1 : i32, i32
  }
  func.func @transform_2(%arg0: i32, %arg1: i32, %arg2: i32) -> (i32, i32) {
    %c0_i32 = arith.constant 0 : i32
    %c0_i32_0 = arith.constant 0 : i32
    return %c0_i32, %arg1 : i32, i32
  }
  func.func @transform_3(%arg0: i32, %arg1: i32, %arg2: i32) -> (i32, i32) {
    %c0_i32 = arith.constant 0 : i32
    return %arg0, %arg1 : i32, i32
  }
}

module attributes {stable_mosaic.version = 11 : i64} {
  func.func @kernel(%arg0: i32, %arg1: i32, %arg2: i32, %arg3: memref<512x384xbf16, #tpu.memory_space<vmem>>, %arg4: memref<384x128xbf16, #tpu.memory_space<vmem>>, %arg5: memref<1x128xf32, #tpu.memory_space<vmem>>, %arg6: memref<512x128xf32, #tpu.memory_space<vmem>>, %arg7: memref<512x128xf32, #tpu.memory_space<vmem>>) attributes {dimension_semantics = [#tpu.dimension_semantics<parallel>, #tpu.dimension_semantics<parallel>, #tpu.dimension_semantics<arbitrary>], iteration_bounds = array<i64: 1, 1, 1>, scalar_prefetch = 0 : i64, scratch_operands = 1 : i64, tpu.core_type = #tpu.core_type<tc>, window_params = [{transform_indices = @transform_0, window_bounds = array<i64: 512, 384>}, {transform_indices = @transform_1, window_bounds = array<i64: 384, 128>}, {transform_indices = @transform_2, window_bounds = array<i64: 1, 128>}, {transform_indices = @transform_3, window_bounds = array<i64: 512, 128>}]} {
    %c0_i32 = arith.constant 0 : i32
    %0 = arith.cmpi eq, %arg2, %c0_i32 : i32
    %1 = arith.extui %0 : i1 to i32
    %c0_i32_0 = arith.constant 0 : i32
    %2 = arith.cmpi ne, %1, %c0_i32_0 : i32
    scf.if %2 {
      %cst_10 = arith.constant 0.000000e+00 : f32
      %12 = vector.broadcast %cst_10 : f32 to vector<512x128xf32>
      %c0_11 = arith.constant 0 : index
      %c0_12 = arith.constant 0 : index
      %13 = vector.load %arg7[%c0_11, %c0_12] : memref<512x128xf32, #tpu.memory_space<vmem>>, vector<512x128xf32>
      tpu.vector_store %arg7[%c0_11, %c0_12], %12 {strides = array<i32>} : memref<512x128xf32, #tpu.memory_space<vmem>>, vector<512x128xf32>,
    } else {
    }
    %c0 = arith.constant 0 : index
    %c0_1 = arith.constant 0 : index
    %3 = vector.load %arg7[%c0, %c0_1] : memref<512x128xf32, #tpu.memory_space<vmem>>, vector<512x128xf32>
    %c0_2 = arith.constant 0 : index
    %c0_3 = arith.constant 0 : index
    %4 = vector.load %arg3[%c0_2, %c0_3] : memref<512x384xbf16, #tpu.memory_space<vmem>>, vector<512x384xbf16>
    %c0_4 = arith.constant 0 : index
    %c0_5 = arith.constant 0 : index
    %5 = vector.load %arg4[%c0_4, %c0_5] : memref<384x128xbf16, #tpu.memory_space<vmem>>, vector<384x128xbf16>
    %cst = arith.constant dense<0.000000e+00> : vector<512x128xf32>
    %6 = tpu.matmul %4, %5, %cst {dimension_numbers = #tpu.dot_dimension_numbers<[1], [0], [0], [1], [0, 0, 1, 1], [], []>} : vector<512x384xbf16>, vector<384x128xbf16>, vector<512x128xf32> -> vector<512x128xf32>
    %7 = arith.addf %3, %6 : vector<512x128xf32>
    %c0_6 = arith.constant 0 : index
    %c0_7 = arith.constant 0 : index
    %8 = vector.load %arg7[%c0_6, %c0_7] : memref<512x128xf32, #tpu.memory_space<vmem>>, vector<512x128xf32>
    tpu.vector_store %arg7[%c0_6, %c0_7], %7 {strides = array<i32>} : memref<512x128xf32, #tpu.memory_space<vmem>>, vector<512x128xf32>,
    %c0_i32_8 = arith.constant 0 : i32
    %9 = arith.cmpi eq, %arg2, %c0_i32_8 : i32
    %10 = arith.extui %9 : i1 to i32
    %c0_i32_9 = arith.constant 0 : i32
    %11 = arith.cmpi ne, %10, %c0_i32_9 : i32
    scf.if %11 {
      %c0_10 = arith.constant 0 : index
      %c0_11 = arith.constant 0 : index
      %12 = vector.load %arg7[%c0_10, %c0_11] : memref<512x128xf32, #tpu.memory_space<vmem>>, vector<512x128xf32>
      %c0_12 = arith.constant 0 : index
      %c0_13 = arith.constant 0 : index
      %13 = vector.load %arg5[%c0_12, %c0_13] : memref<1x128xf32, #tpu.memory_space<vmem>>, vector<1x128xf32>
      %14 = vector.broadcast %13 : vector<1x128xf32> to vector<512x128xf32>
      %15 = arith.addf %12, %14 : vector<512x128xf32>
      %cst_14 = arith.constant 0.000000e+00 : f32
      %16 = vector.broadcast %cst_14 : f32 to vector<512x128xf32>
      %17 = arith.maximumf %15, %16 : vector<512x128xf32>
      %c0_15 = arith.constant 0 : index
      %c0_16 = arith.constant 0 : index
      %18 = vector.load %arg6[%c0_15, %c0_16] : memref<512x128xf32, #tpu.memory_space<vmem>>, vector<512x128xf32>
      tpu.vector_store %arg6[%c0_15, %c0_16], %17 {strides = array<i32>} : memref<512x128xf32, #tpu.memory_space<vmem>>, vector<512x128xf32>,
    } else {
    }
    return
  }
  func.func @transform_0(%arg0: i32, %arg1: i32, %arg2: i32) -> (i32, i32) {
    %c0_i32 = arith.constant 0 : i32
    return %arg0, %arg2 : i32, i32
  }
  func.func @transform_1(%arg0: i32, %arg1: i32, %arg2: i32) -> (i32, i32) {
    %c0_i32 = arith.constant 0 : i32
    return %arg2, %arg1 : i32, i32
  }
  func.func @transform_2(%arg0: i32, %arg1: i32, %arg2: i32) -> (i32, i32) {
    %c0_i32 = arith.constant 0 : i32
    %c0_i32_0 = arith.constant 0 : i32
    return %c0_i32, %arg1 : i32, i32
  }
  func.func @transform_3(%arg0: i32, %arg1: i32, %arg2: i32) -> (i32, i32) {
    %c0_i32 = arith.constant 0 : i32
    return %arg0, %arg1 : i32, i32
  }
}

</mosaic_0001>

<bundles_post_ra>
// kernel: _stem_jit.3
= control target key start
LH: loop header
LB: loop body
LE: loop exit
PB: predicated region body
PF: predicated region fallthrough
CT: control target
= control target key end

     0   :  { %s1772_s1 = inlined_call_operand.vmem [shape: bf16[128,128], index: 1, kind: input, shape index: {}]   ;;  %s1773_s0 = inlined_call_operand.vmem [shape: bf16[512,128], index: 0, kind: input, shape index: {}]   ;;  %s1774_s2 = inlined_call_operand.vmem [shape: f32[1,128], index: 2, kind: input, shape index: {}]   ;;  %s1775_s3 = inlined_call_operand.vmem [shape: f32[512,128], index: 3, kind: output, shape index: {}]  }
   0x1   :  { %v1331_v0 = vld [vmem:[%s1772_s1 + $0x38] sm:$0xff]   ;;  %v1332_v1 = vld [vmem:[%s1772_s1 + $0x30] sm:$0xff]   ;;  %v1333_v2 = vld [vmem:[%s1772_s1 + $0x28] sm:$0xff]  }
   0x2   :  { %1235 = vmatprep.subr.bf16.mxu0 %v1331_v0  ;;  %1315 = vmatprep.subr.bf16.mxu1 %v1331_v0  ;;  %v1334_v3 = vld [vmem:[%s1772_s1 + $0x20] sm:$0xff]   ;;  %v1335_v6 = vld [vmem:[%s1772_s1 + $0x18] sm:$0xff]   ;;  %v1336_v7 = vld [vmem:[%s1772_s1 + $0x10] sm:$0xff]  }
   0x3   :  { %1236 = vmatpush3.bf16.msra.mxu0 %v1331_v0  ;;  %1323 = vmatpush3.bf16.msra.mxu1 %v1331_v0  ;;  %v1339_v4 = vld [vmem:[%s1773_s0] sm:$0xff]   ;;  %v1337_v8 = vld [vmem:[%s1772_s1 + $0x8] sm:$0xff]   ;;  %v1343_v12 = vld [vmem:[%s1773_s0 + $0x10] sm:$0xff]  }
   0x4   :  { %1237 = vmatprep.subr.bf16.mxu0 %v1332_v1  ;;  %1316 = vmatprep.subr.bf16.mxu1 %v1332_v1  ;;  %v1340_v5 = vld [vmem:[%s1773_s0 + $0x80] sm:$0xff]   ;;  %v1341_v10 = vld [vmem:[%s1773_s0 + $0x8] sm:$0xff]   ;;  %v1344_v13 = vld [vmem:[%s1773_s0 + $0x90] sm:$0xff]  }
   0x5   :  { %1251 = vmatprep.mubr.bf16.mxu0 %v1339_v4  ;;  %1283 = vmatprep.mubr.bf16.mxu1 %v1340_v5  ;;  %v1338_v9 = vld [vmem:[%s1772_s1] sm:$0xff]   ;;  %v1342_v11 = vld [vmem:[%s1773_s0 + $0x88] sm:$0xff]   ;;  %v1345_v14 = vld [vmem:[%s1773_s0 + $0x18] sm:$0xff]  }
   0x6   :  { %v1346_v15 = vld [vmem:[%s1773_s0 + $0x98] sm:$0xff]   ;;  %v1347_v16 = vld [vmem:[%s1773_s0 + $0x20] sm:$0xff]   ;;  %v1349_v18 = vld [vmem:[%s1773_s0 + $0x28] sm:$0xff]  }
   0x7   :  { %1238 = vmatpush3.bf16.msra.mxu0 %v1332_v1  ;;  %1324 = vmatpush3.bf16.msra.mxu1 %v1332_v1  ;;  %v1348_v17 = vld [vmem:[%s1773_s0 + $0xa0] sm:$0xff]   ;;  %v1350_v19 = vld [vmem:[%s1773_s0 + $0xa8] sm:$0xff]   ;;  %v1351_v20 = vld [vmem:[%s1773_s0 + $0x30] sm:$0xff]  }
   0x8   :  { %1239 = vmatprep.subr.bf16.mxu0 %v1333_v2  ;;  %1317 = vmatprep.subr.bf16.mxu1 %v1333_v2  ;;  %v1352_v21 = vld [vmem:[%s1773_s0 + $0xb0] sm:$0xff]   ;;  %v1353_v22 = vld [vmem:[%s1773_s0 + $0x38] sm:$0xff]   ;;  %v1355_v24 = vld [vmem:[%s1773_s0 + $0x40] sm:$0xff]  }
   0x9   :  { %v1354_v23 = vld [vmem:[%s1773_s0 + $0xb8] sm:$0xff]   ;;  %v1356_v25 = vld [vmem:[%s1773_s0 + $0xc0] sm:$0xff]   ;;  %v1357_v26 = vld [vmem:[%s1773_s0 + $0x48] sm:$0xff]  }
   0xa   :  { %v1358_v27 = vld [vmem:[%s1773_s0 + $0xc8] sm:$0xff]   ;;  %v1359_v28 = vld [vmem:[%s1773_s0 + $0x50] sm:$0xff]   ;;  %v1361_v30 = vld [vmem:[%s1773_s0 + $0x58] sm:$0xff]  }
   0xb   :  { %1240 = vmatpush3.bf16.msra.mxu0 %v1333_v2  ;;  %1325 = vmatpush3.bf16.msra.mxu1 %v1333_v2  ;;  %v1360_v29 = vld [vmem:[%s1773_s0 + $0xd0] sm:$0xff]   ;;  %v1362_v31 = vld [vmem:[%s1773_s0 + $0xd8] sm:$0xff]   ;;  %v1363_v32 = vld [vmem:[%s1773_s0 + $0x60] sm:$0xff]  }
   0xc   :  { %1241 = vmatprep.subr.bf16.mxu0 %v1334_v3  ;;  %1318 = vmatprep.subr.bf16.mxu1 %v1334_v3  ;;  %v1364_v33 = vld [vmem:[%s1773_s0 + $0xe0] sm:$0xff]   ;;  %v1365_v34 = vld [vmem:[%s1773_s0 + $0x68] sm:$0xff]   ;;  %v1367_v36 = vld [vmem:[%s1773_s0 + $0x70] sm:$0xff]  }
   0xd   :  { %v1366_v35 = vld [vmem:[%s1773_s0 + $0xe8] sm:$0xff]   ;;  %v1368_v37 = vld [vmem:[%s1773_s0 + $0xf0] sm:$0xff]   ;;  %v1369_v38 = vld [vmem:[%s1773_s0 + $0x78] sm:$0xff]  }
   0xe   :  { %v1370_v39 = vld [vmem:[%s1773_s0 + $0xf8] sm:$0xff]   ;;  %v1514_v40 = vld [vmem:[%s1774_s2] ss:$0 sm:$0xff] }
   0xf   :  { %1242 = vmatpush3.bf16.msra.mxu0 %v1334_v3  ;;  %1326 = vmatpush3.bf16.msra.mxu1 %v1334_v3 }
  0x10   :  { %1243 = vmatprep.subr.bf16.mxu0 %v1335_v6  ;;  %1319 = vmatprep.subr.bf16.mxu1 %v1335_v6 }
  0x13   :  { %1244 = vmatpush3.bf16.msra.mxu0 %v1335_v6  ;;  %1327 = vmatpush3.bf16.msra.mxu1 %v1335_v6 }
  0x14   :  { %1245 = vmatprep.subr.bf16.mxu0 %v1336_v7  ;;  %1320 = vmatprep.subr.bf16.mxu1 %v1336_v7 }
  0x17   :  { %1246 = vmatpush3.bf16.msra.mxu0 %v1336_v7  ;;  %1328 = vmatpush3.bf16.msra.mxu1 %v1336_v7 }
  0x18   :  { %1247 = vmatprep.subr.bf16.mxu0 %v1337_v8  ;;  %1321 = vmatprep.subr.bf16.mxu1 %v1337_v8 }
  0x1b   :  { %1248 = vmatpush3.bf16.msra.mxu0 %v1337_v8  ;;  %1329 = vmatpush3.bf16.msra.mxu1 %v1337_v8 }
  0x1c   :  { %1249 = vmatprep.subr.bf16.mxu0 %v1338_v9  ;;  %1322 = vmatprep.subr.bf16.mxu1 %v1338_v9 }
  0x1f   :  { %1250 = vmatpush3.bf16.msra.mxu0 %v1338_v9  ;;  %1330 = vmatpush3.bf16.msra.mxu1 %v1338_v9 }
  0x22   :  { %1252 = vmatmul.mubr.bf16.vlgmr.msra.gmra.mxu0 %v1341_v10  ;;  %1284 = vmatmul.mubr.bf16.vlgmr.msra.gmra.mxu1 %v1342_v11 }
  0x23   :  { %1255 = vmatprep.mubr.bf16.mxu0 %v1343_v12  ;;  %1287 = vmatprep.mubr.bf16.mxu1 %v1344_v13 }
  0x2a   :  { %1256 = vmatmul.mubr.bf16.gmra.mxu0 %v1345_v14  ;;  %1288 = vmatmul.mubr.bf16.gmra.mxu1 %v1346_v15 }
  0x2b   :  { %1259 = vmatprep.mubr.bf16.mxu0 %v1347_v16  ;;  %1291 = vmatprep.mubr.bf16.mxu1 %v1348_v17 }
  0x32   :  { %1260 = vmatmul.mubr.bf16.gmra.mxu0 %v1349_v18  ;;  %1292 = vmatmul.mubr.bf16.gmra.mxu1 %v1350_v19 }
  0x33   :  { %1263 = vmatprep.mubr.bf16.mxu0 %v1351_v20  ;;  %1295 = vmatprep.mubr.bf16.mxu1 %v1352_v21 }
  0x3a   :  { %1264 = vmatmul.mubr.bf16.gmra.mxu0 %v1353_v22  ;;  %1296 = vmatmul.mubr.bf16.gmra.mxu1 %v1354_v23 }
  0x3b   :  { %1267 = vmatprep.mubr.bf16.mxu0 %v1355_v24  ;;  %1299 = vmatprep.mubr.bf16.mxu1 %v1356_v25 }
  0x42   :  { %1268 = vmatmul.mubr.bf16.gmra.mxu0 %v1357_v26  ;;  %1300 = vmatmul.mubr.bf16.gmra.mxu1 %v1358_v27 }
  0x43   :  { %1271 = vmatprep.mubr.bf16.mxu0 %v1359_v28  ;;  %1303 = vmatprep.mubr.bf16.mxu1 %v1360_v29 }
  0x4a   :  { %1272 = vmatmul.mubr.bf16.gmra.mxu0 %v1361_v30  ;;  %1304 = vmatmul.mubr.bf16.gmra.mxu1 %v1362_v31 }
  0x4b   :  { %1275 = vmatprep.mubr.bf16.mxu0 %v1363_v32  ;;  %1307 = vmatprep.mubr.bf16.mxu1 %v1364_v33 }
  0x52   :  { %1276 = vmatmul.mubr.bf16.gmra.mxu0 %v1365_v34  ;;  %1308 = vmatmul.mubr.bf16.gmra.mxu1 %v1366_v35 }
  0x53   :  { %1279 = vmatprep.mubr.bf16.mxu0 %v1367_v36  ;;  %1311 = vmatprep.mubr.bf16.mxu1 %v1368_v37 }
  0x5a   :  { %1280 = vmatmul.mubr.bf16.gmra.mxu0 %v1369_v38  ;;  %1312 = vmatmul.mubr.bf16.gmra.mxu1 %v1370_v39 }
  0xe2   :  { %v1253_v41 = vpop.f32.mrf.mxu0  ;;  %v1285_v42 = vpop.f32.mrf.mxu1 }
  0xe3   :  { %v960_v43 = vadd.f32 %v1253_v41, %v1514_v40  ;;  %v992_v44 = vadd.f32 %v1285_v42, %v1514_v40 }
  0xe4   :  { %v501_v45 = vpop.f32.mrf.mxu0  ;;  %v629_v46 = vpop.f32.mrf.mxu1 }
  0xe5   :  { %v1024_v47 = vmax.f32 %v960_v43, 0.0  ;;  %v1056_v48 = vmax.f32 %v992_v44, 0.0  ;;  %v958_v49 = vadd.f32 %v1514_v40, %v501_v45  ;;  %v990_v50 = vadd.f32 %v1514_v40, %v629_v46 }
  0xe6   :  { %v1254_v51 = vpop.f32.mrf.mxu0  ;;  %v1286_v52 = vpop.f32.mrf.mxu1 }
  0xe7   :  { %1088 = vst [vmem:[%s1775_s3 + $0x10] sm:$0xff] %v1024_v47  ;;  %1120 = vst [vmem:[%s1775_s3 + $0x110] sm:$0xff] %v1056_v48  ;;  %v1022_v53 = vmax.f32 %v958_v49, 0.0  ;;  %v1054_v54 = vmax.f32 %v990_v50, 0.0  ;;  %v961_v55 = vadd.f32 %v1254_v51, %v1514_v40  ;;  %v993_v56 = vadd.f32 %v1286_v52, %v1514_v40 }
  0xe8   :  { %v504_v57 = vpop.f32.mrf.mxu0  ;;  %v632_v58 = vpop.f32.mrf.mxu1 }
  0xe9   :  { %1086 = vst [vmem:[%s1775_s3] sm:$0xff] %v1022_v53  ;;  %1118 = vst [vmem:[%s1775_s3 + $0x100] sm:$0xff] %v1054_v54  ;;  %v1025_v59 = vmax.f32 %v961_v55, 0.0  ;;  %v1057_v60 = vmax.f32 %v993_v56, 0.0  ;;  %v959_v61 = vadd.f32 %v1514_v40, %v504_v57  ;;  %v991_v62 = vadd.f32 %v1514_v40, %v632_v58 }
  0xea   :  { %v1257_v63 = vpop.f32.mrf.mxu0  ;;  %v1289_v0 = vpop.f32.mrf.mxu1 }
  0xeb   :  { %1089 = vst [vmem:[%s1775_s3 + $0x18] sm:$0xff] %v1025_v59  ;;  %1121 = vst [vmem:[%s1775_s3 + $0x118] sm:$0xff] %v1057_v60  ;;  %v1023_v1 = vmax.f32 %v959_v61, 0.0  ;;  %v1055_v2 = vmax.f32 %v991_v62, 0.0  ;;  %v964_v3 = vadd.f32 %v1257_v63, %v1514_v40  ;;  %v996_v4 = vadd.f32 %v1289_v0, %v1514_v40 }
  0xec   :  { %v517_v5 = vpop.f32.mrf.mxu0  ;;  %v645_v6 = vpop.f32.mrf.mxu1 }
  0xed   :  { %1087 = vst [vmem:[%s1775_s3 + $0x8] sm:$0xff] %v1023_v1  ;;  %1119 = vst [vmem:[%s1775_s3 + $0x108] sm:$0xff] %v1055_v2  ;;  %v1028_v7 = vmax.f32 %v964_v3, 0.0  ;;  %v1060_v8 = vmax.f32 %v996_v4, 0.0  ;;  %v962_v9 = vadd.f32 %v1514_v40, %v517_v5  ;;  %v994_v10 = vadd.f32 %v1514_v40, %v645_v6 }
  0xee   :  { %v1258_v11 = vpop.f32.mrf.mxu0  ;;  %v1290_v12 = vpop.f32.mrf.mxu1 }
  0xef   :  { %1092 = vst [vmem:[%s1775_s3 + $0x30] sm:$0xff] %v1028_v7  ;;  %1124 = vst [vmem:[%s1775_s3 + $0x130] sm:$0xff] %v1060_v8  ;;  %v1026_v13 = vmax.f32 %v962_v9, 0.0  ;;  %v1058_v14 = vmax.f32 %v994_v10, 0.0  ;;  %v965_v15 = vadd.f32 %v1258_v11, %v1514_v40  ;;  %v997_v16 = vadd.f32 %v1290_v12, %v1514_v40 }
  0xf0   :  { %v520_v17 = vpop.f32.mrf.mxu0  ;;  %v648_v18 = vpop.f32.mrf.mxu1 }
  0xf1   :  { %1090 = vst [vmem:[%s1775_s3 + $0x20] sm:$0xff] %v1026_v13  ;;  %1122 = vst [vmem:[%s1775_s3 + $0x120] sm:$0xff] %v1058_v14  ;;  %v1029_v19 = vmax.f32 %v965_v15, 0.0  ;;  %v1061_v20 = vmax.f32 %v997_v16, 0.0  ;;  %v963_v21 = vadd.f32 %v1514_v40, %v520_v17  ;;  %v995_v22 = vadd.f32 %v1514_v40, %v648_v18 }
  0xf2   :  { %v1261_v23 = vpop.f32.mrf.mxu0  ;;  %v1293_v24 = vpop.f32.mrf.mxu1 }
  0xf3   :  { %1093 = vst [vmem:[%s1775_s3 + $0x38] sm:$0xff] %v1029_v19  ;;  %1125 = vst [vmem:[%s1775_s3 + $0x138] sm:$0xff] %v1061_v20  ;;  %v1027_v25 = vmax.f32 %v963_v21, 0.0  ;;  %v1059_v26 = vmax.f32 %v995_v22, 0.0  ;;  %v968_v27 = vadd.f32 %v1261_v23, %v1514_v40  ;;  %v1000_v28 = vadd.f32 %v1293_v24, %v1514_v40 }
  0xf4   :  { %v533_v29 = vpop.f32.mrf.mxu0  ;;  %v661_v30 = vpop.f32.mrf.mxu1 }
  0xf5   :  { %1091 = vst [vmem:[%s1775_s3 + $0x28] sm:$0xff] %v1027_v25  ;;  %1123 = vst [vmem:[%s1775_s3 + $0x128] sm:$0xff] %v1059_v26  ;;  %v1032_v31 = vmax.f32 %v968_v27, 0.0  ;;  %v1064_v32 = vmax.f32 %v1000_v28, 0.0  ;;  %v966_v33 = vadd.f32 %v1514_v40, %v533_v29  ;;  %v998_v34 = vadd.f32 %v1514_v40, %v661_v30 }
  0xf6   :  { %v1262_v35 = vpop.f32.mrf.mxu0  ;;  %v1294_v36 = vpop.f32.mrf.mxu1 }
  0xf7   :  { %1096 = vst [vmem:[%s1775_s3 + $0x50] sm:$0xff] %v1032_v31  ;;  %1128 = vst [vmem:[%s1775_s3 + $0x150] sm:$0xff] %v1064_v32  ;;  %v1030_v37 = vmax.f32 %v966_v33, 0.0  ;;  %v1062_v38 = vmax.f32 %v998_v34, 0.0  ;;  %v969_v39 = vadd.f32 %v1262_v35, %v1514_v40  ;;  %v1001_v41 = vadd.f32 %v1294_v36, %v1514_v40 }
  0xf8   :  { %v536_v42 = vpop.f32.mrf.mxu0  ;;  %v664_v43 = vpop.f32.mrf.mxu1 }
  0xf9   :  { %1094 = vst [vmem:[%s1775_s3 + $0x40] sm:$0xff] %v1030_v37  ;;  %1126 = vst [vmem:[%s1775_s3 + $0x140] sm:$0xff] %v1062_v38  ;;  %v1033_v44 = vmax.f32 %v969_v39, 0.0  ;;  %v1065_v45 = vmax.f32 %v1001_v41, 0.0  ;;  %v967_v46 = vadd.f32 %v1514_v40, %v536_v42  ;;  %v999_v47 = vadd.f32 %v1514_v40, %v664_v43 }
  0xfa   :  { %v1265_v48 = vpop.f32.mrf.mxu0  ;;  %v1297_v49 = vpop.f32.mrf.mxu1 }
  0xfb   :  { %1097 = vst [vmem:[%s1775_s3 + $0x58] sm:$0xff] %v1033_v44  ;;  %1129 = vst [vmem:[%s1775_s3 + $0x158] sm:$0xff] %v1065_v45  ;;  %v1031_v50 = vmax.f32 %v967_v46, 0.0  ;;  %v1063_v51 = vmax.f32 %v999_v47, 0.0  ;;  %v972_v52 = vadd.f32 %v1265_v48, %v1514_v40  ;;  %v1004_v53 = vadd.f32 %v1297_v49, %v1514_v40 }
  0xfc   :  { %v549_v54 = vpop.f32.mrf.mxu0  ;;  %v677_v55 = vpop.f32.mrf.mxu1 }
  0xfd   :  { %1095 = vst [vmem:[%s1775_s3 + $0x48] sm:$0xff] %v1031_v50  ;;  %1127 = vst [vmem:[%s1775_s3 + $0x148] sm:$0xff] %v1063_v51  ;;  %v1036_v56 = vmax.f32 %v972_v52, 0.0  ;;  %v1068_v57 = vmax.f32 %v1004_v53, 0.0  ;;  %v970_v58 = vadd.f32 %v1514_v40, %v549_v54  ;;  %v1002_v59 = vadd.f32 %v1514_v40, %v677_v55 }
  0xfe   :  { %v1266_v60 = vpop.f32.mrf.mxu0  ;;  %v1298_v61 = vpop.f32.mrf.mxu1 }
  0xff   :  { %1100 = vst [vmem:[%s1775_s3 + $0x70] sm:$0xff] %v1036_v56  ;;  %1132 = vst [vmem:[%s1775_s3 + $0x170] sm:$0xff] %v1068_v57  ;;  %v1034_v62 = vmax.f32 %v970_v58, 0.0  ;;  %v1066_v63 = vmax.f32 %v1002_v59, 0.0  ;;  %v973_v0 = vadd.f32 %v1266_v60, %v1514_v40  ;;  %v1005_v1 = vadd.f32 %v1298_v61, %v1514_v40 }
 0x100   :  { %v552_v2 = vpop.f32.mrf.mxu0  ;;  %v680_v3 = vpop.f32.mrf.mxu1 }
 0x101   :  { %1098 = vst [vmem:[%s1775_s3 + $0x60] sm:$0xff] %v1034_v62  ;;  %1130 = vst [vmem:[%s1775_s3 + $0x160] sm:$0xff] %v1066_v63  ;;  %v1037_v4 = vmax.f32 %v973_v0, 0.0  ;;  %v1069_v5 = vmax.f32 %v1005_v1, 0.0  ;;  %v971_v6 = vadd.f32 %v1514_v40, %v552_v2  ;;  %v1003_v7 = vadd.f32 %v1514_v40, %v680_v3 }
 0x102   :  { %v1269_v8 = vpop.f32.mrf.mxu0  ;;  %v1301_v9 = vpop.f32.mrf.mxu1 }
 0x103   :  { %1101 = vst [vmem:[%s1775_s3 + $0x78] sm:$0xff] %v1037_v4  ;;  %1133 = vst [vmem:[%s1775_s3 + $0x178] sm:$0xff] %v1069_v5  ;;  %v1035_v10 = vmax.f32 %v971_v6, 0.0  ;;  %v1067_v11 = vmax.f32 %v1003_v7, 0.0  ;;  %v976_v12 = vadd.f32 %v1269_v8, %v1514_v40  ;;  %v1008_v13 = vadd.f32 %v1301_v9, %v1514_v40 }
 0x104   :  { %v565_v14 = vpop.f32.mrf.mxu0  ;;  %v693_v15 = vpop.f32.mrf.mxu1 }
 0x105   :  { %1099 = vst [vmem:[%s1775_s3 + $0x68] sm:$0xff] %v1035_v10  ;;  %1131 = vst [vmem:[%s1775_s3 + $0x168] sm:$0xff] %v1067_v11  ;;  %v1040_v16 = vmax.f32 %v976_v12, 0.0  ;;  %v1072_v17 = vmax.f32 %v1008_v13, 0.0  ;;  %v974_v18 = vadd.f32 %v1514_v40, %v565_v14  ;;  %v1006_v19 = vadd.f32 %v1514_v40, %v693_v15 }
 0x106   :  { %v1270_v20 = vpop.f32.mrf.mxu0  ;;  %v1302_v21 = vpop.f32.mrf.mxu1 }
 0x107   :  { %1104 = vst [vmem:[%s1775_s3 + $0x90] sm:$0xff] %v1040_v16  ;;  %1136 = vst [vmem:[%s1775_s3 + $0x190] sm:$0xff] %v1072_v17  ;;  %v1038_v22 = vmax.f32 %v974_v18, 0.0  ;;  %v1070_v23 = vmax.f32 %v1006_v19, 0.0  ;;  %v977_v24 = vadd.f32 %v1270_v20, %v1514_v40  ;;  %v1009_v25 = vadd.f32 %v1302_v21, %v1514_v40 }
 0x108   :  { %v568_v26 = vpop.f32.mrf.mxu0  ;;  %v696_v27 = vpop.f32.mrf.mxu1 }
 0x109   :  { %1102 = vst [vmem:[%s1775_s3 + $0x80] sm:$0xff] %v1038_v22  ;;  %1134 = vst [vmem:[%s1775_s3 + $0x180] sm:$0xff] %v1070_v23  ;;  %v1041_v28 = vmax.f32 %v977_v24, 0.0  ;;  %v1073_v29 = vmax.f32 %v1009_v25, 0.0  ;;  %v975_v30 = vadd.f32 %v1514_v40, %v568_v26  ;;  %v1007_v31 = vadd.f32 %v1514_v40, %v696_v27 }
 0x10a   :  { %v1273_v32 = vpop.f32.mrf.mxu0  ;;  %v1305_v33 = vpop.f32.mrf.mxu1 }
 0x10b   :  { %1105 = vst [vmem:[%s1775_s3 + $0x98] sm:$0xff] %v1041_v28  ;;  %1137 = vst [vmem:[%s1775_s3 + $0x198] sm:$0xff] %v1073_v29  ;;  %v1039_v34 = vmax.f32 %v975_v30, 0.0  ;;  %v1071_v35 = vmax.f32 %v1007_v31, 0.0  ;;  %v980_v36 = vadd.f32 %v1273_v32, %v1514_v40  ;;  %v1012_v37 = vadd.f32 %v1305_v33, %v1514_v40 }
 0x10c   :  { %v581_v38 = vpop.f32.mrf.mxu0  ;;  %v709_v39 = vpop.f32.mrf.mxu1 }
 0x10d   :  { %1103 = vst [vmem:[%s1775_s3 + $0x88] sm:$0xff] %v1039_v34  ;;  %1135 = vst [vmem:[%s1775_s3 + $0x188] sm:$0xff] %v1071_v35  ;;  %v1044_v41 = vmax.f32 %v980_v36, 0.0  ;;  %v1076_v42 = vmax.f32 %v1012_v37, 0.0  ;;  %v978_v43 = vadd.f32 %v1514_v40, %v581_v38  ;;  %v1010_v44 = vadd.f32 %v1514_v40, %v709_v39 }
 0x10e   :  { %v1274_v45 = vpop.f32.mrf.mxu0  ;;  %v1306_v46 = vpop.f32.mrf.mxu1 }
 0x10f   :  { %1108 = vst [vmem:[%s1775_s3 + $0xb0] sm:$0xff] %v1044_v41  ;;  %1140 = vst [vmem:[%s1775_s3 + $0x1b0] sm:$0xff] %v1076_v42  ;;  %v1042_v47 = vmax.f32 %v978_v43, 0.0  ;;  %v1074_v48 = vmax.f32 %v1010_v44, 0.0  ;;  %v981_v49 = vadd.f32 %v1274_v45, %v1514_v40  ;;  %v1013_v50 = vadd.f32 %v1306_v46, %v1514_v40 }
 0x110   :  { %v584_v51 = vpop.f32.mrf.mxu0  ;;  %v712_v52 = vpop.f32.mrf.mxu1 }
 0x111   :  { %1106 = vst [vmem:[%s1775_s3 + $0xa0] sm:$0xff] %v1042_v47  ;;  %1138 = vst [vmem:[%s1775_s3 + $0x1a0] sm:$0xff] %v1074_v48  ;;  %v1045_v53 = vmax.f32 %v981_v49, 0.0  ;;  %v1077_v54 = vmax.f32 %v1013_v50, 0.0  ;;  %v979_v55 = vadd.f32 %v1514_v40, %v584_v51  ;;  %v1011_v56 = vadd.f32 %v1514_v40, %v712_v52 }
 0x112   :  { %v1277_v57 = vpop.f32.mrf.mxu0  ;;  %v1309_v58 = vpop.f32.mrf.mxu1 }
 0x113   :  { %1109 = vst [vmem:[%s1775_s3 + $0xb8] sm:$0xff] %v1045_v53  ;;  %1141 = vst [vmem:[%s1775_s3 + $0x1b8] sm:$0xff] %v1077_v54  ;;  %v1043_v59 = vmax.f32 %v979_v55, 0.0  ;;  %v1075_v60 = vmax.f32 %v1011_v56, 0.0  ;;  %v984_v61 = vadd.f32 %v1277_v57, %v1514_v40  ;;  %v1016_v62 = vadd.f32 %v1309_v58, %v1514_v40 }
 0x114   :  { %v597_v63 = vpop.f32.mrf.mxu0  ;;  %v725_v0 = vpop.f32.mrf.mxu1 }
 0x115   :  { %1107 = vst [vmem:[%s1775_s3 + $0xa8] sm:$0xff] %v1043_v59  ;;  %1139 = vst [vmem:[%s1775_s3 + $0x1a8] sm:$0xff] %v1075_v60  ;;  %v1048_v1 = vmax.f32 %v984_v61, 0.0  ;;  %v1080_v2 = vmax.f32 %v1016_v62, 0.0  ;;  %v982_v3 = vadd.f32 %v1514_v40, %v597_v63  ;;  %v1014_v4 = vadd.f32 %v1514_v40, %v725_v0 }
 0x116   :  { %v1278_v5 = vpop.f32.mrf.mxu0  ;;  %v1310_v6 = vpop.f32.mrf.mxu1 }
 0x117   :  { %1112 = vst [vmem:[%s1775_s3 + $0xd0] sm:$0xff] %v1048_v1  ;;  %1144 = vst [vmem:[%s1775_s3 + $0x1d0] sm:$0xff] %v1080_v2  ;;  %v1046_v7 = vmax.f32 %v982_v3, 0.0  ;;  %v1078_v8 = vmax.f32 %v1014_v4, 0.0  ;;  %v985_v9 = vadd.f32 %v1278_v5, %v1514_v40  ;;  %v1017_v10 = vadd.f32 %v1310_v6, %v1514_v40 }
 0x118   :  { %v600_v11 = vpop.f32.mrf.mxu0  ;;  %v728_v12 = vpop.f32.mrf.mxu1 }
 0x119   :  { %1110 = vst [vmem:[%s1775_s3 + $0xc0] sm:$0xff] %v1046_v7  ;;  %1142 = vst [vmem:[%s1775_s3 + $0x1c0] sm:$0xff] %v1078_v8  ;;  %v1049_v13 = vmax.f32 %v985_v9, 0.0  ;;  %v1081_v14 = vmax.f32 %v1017_v10, 0.0  ;;  %v983_v15 = vadd.f32 %v1514_v40, %v600_v11  ;;  %v1015_v16 = vadd.f32 %v1514_v40, %v728_v12 }
 0x11a   :  { %v1281_v17 = vpop.f32.mrf.mxu0  ;;  %v1313_v18 = vpop.f32.mrf.mxu1 }
 0x11b   :  { %1113 = vst [vmem:[%s1775_s3 + $0xd8] sm:$0xff] %v1049_v13  ;;  %1145 = vst [vmem:[%s1775_s3 + $0x1d8] sm:$0xff] %v1081_v14  ;;  %v1047_v19 = vmax.f32 %v983_v15, 0.0  ;;  %v1079_v20 = vmax.f32 %v1015_v16, 0.0  ;;  %v988_v21 = vadd.f32 %v1281_v17, %v1514_v40  ;;  %v1020_v22 = vadd.f32 %v1313_v18, %v1514_v40 }
 0x11c   :  { %v613_v23 = vpop.f32.mrf.mxu0  ;;  %v741_v24 = vpop.f32.mrf.mxu1 }
 0x11d   :  { %1111 = vst [vmem:[%s1775_s3 + $0xc8] sm:$0xff] %v1047_v19  ;;  %1143 = vst [vmem:[%s1775_s3 + $0x1c8] sm:$0xff] %v1079_v20  ;;  %v1052_v25 = vmax.f32 %v988_v21, 0.0  ;;  %v1084_v26 = vmax.f32 %v1020_v22, 0.0  ;;  %v986_v27 = vadd.f32 %v1514_v40, %v613_v23  ;;  %v1018_v28 = vadd.f32 %v1514_v40, %v741_v24 }
 0x11e   :  { %v1282_v29 = vpop.f32.mrf.mxu0  ;;  %v1314_v30 = vpop.f32.mrf.mxu1 }
 0x11f   :  { %1116 = vst [vmem:[%s1775_s3 + $0xf0] sm:$0xff] %v1052_v25  ;;  %1148 = vst [vmem:[%s1775_s3 + $0x1f0] sm:$0xff] %v1084_v26  ;;  %v1050_v31 = vmax.f32 %v986_v27, 0.0  ;;  %v1082_v32 = vmax.f32 %v1018_v28, 0.0  ;;  %v989_v33 = vadd.f32 %v1282_v29, %v1514_v40  ;;  %v1021_v34 = vadd.f32 %v1314_v30, %v1514_v40 }
 0x120   :  { %v616_v35 = vpop.f32.mrf.mxu0  ;;  %v744_v36 = vpop.f32.mrf.mxu1 }
 0x121   :  { %1114 = vst [vmem:[%s1775_s3 + $0xe0] sm:$0xff] %v1050_v31  ;;  %1146 = vst [vmem:[%s1775_s3 + $0x1e0] sm:$0xff] %v1082_v32  ;;  %v1053_v37 = vmax.f32 %v989_v33, 0.0  ;;  %v1085_v38 = vmax.f32 %v1021_v34, 0.0  ;;  %v987_v39 = vadd.f32 %v1514_v40, %v616_v35  ;;  %v1019_v41 = vadd.f32 %v1514_v40, %v744_v36 }
 0x123   :  { %1117 = vst [vmem:[%s1775_s3 + $0xf8] sm:$0xff] %v1053_v37  ;;  %1149 = vst [vmem:[%s1775_s3 + $0x1f8] sm:$0xff] %v1085_v38  ;;  %v1051_v42 = vmax.f32 %v987_v39, 0.0  ;;  %v1083_v43 = vmax.f32 %v1019_v41, 0.0 }
 0x125   :  { %1115 = vst [vmem:[%s1775_s3 + $0xe8] sm:$0xff] %v1051_v42  ;;  %1147 = vst [vmem:[%s1775_s3 + $0x1e8] sm:$0xff] %v1083_v43 }

// kernel: _stem_jit.4
= control target key start
LH: loop header
LB: loop body
LE: loop exit
PB: predicated region body
PF: predicated region fallthrough
CT: control target
= control target key end

     0   :  { %v2381_v0 = vmov 0   ;;  %s3181_s1 = inlined_call_operand.vmem [shape: bf16[384,128], index: 1, kind: input, shape index: {}]   ;;  %s3182_s0 = inlined_call_operand.vmem [shape: bf16[512,384], index: 0, kind: input, shape index: {}]   ;;  %s3183_s2 = inlined_call_operand.vmem [shape: f32[1,128], index: 2, kind: input, shape index: {}]   ;;  %s3184_s3 = inlined_call_operand.vmem [shape: f32[512,128], index: 3, kind: output, shape index: {}]  }
   0x1   :  { %979 = vmatprep.subr.bf16.mxu0 %v2381_v0  ;;  %2196 = vmatprep.subr.bf16.mxu1 %v2381_v0  ;;  %v2229_v1 = vld [vmem:[%s3181_s1 + $0x38] sm:$0xff]   ;;  %v2230_v2 = vld [vmem:[%s3181_s1 + $0x30] sm:$0xff]   ;;  %v2231_v3 = vld [vmem:[%s3181_s1 + $0x28] sm:$0xff]  }
   0x2   :  { %980 = vmatpush1.bf16.msra.mxu0 %v2229_v1  ;;  %2212 = vmatpush1.bf16.msra.mxu1 %v2229_v1  ;;  %v2232_v4 = vld [vmem:[%s3181_s1 + $0x20] sm:$0xff]   ;;  %v2233_v5 = vld [vmem:[%s3181_s1 + $0x18] sm:$0xff]   ;;  %v2234_v7 = vld [vmem:[%s3181_s1 + $0x10] sm:$0xff]  }
   0x3   :  { %981 = vmatprep.subr.bf16.mxu0 %v2381_v0  ;;  %2197 = vmatprep.subr.bf16.mxu1 %v2381_v0  ;;  %v2247_v6 = vld [vmem:[%s3182_s0 + $0x4] ss:$12 sps:$4 sm:$0xff]   ;;  %v2235_v9 = vld [vmem:[%s3181_s1 + $0x8] sm:$0xff]   ;;  %v2237_v11 = vld [vmem:[%s3181_s1 + $0x78] sm:$0xff]  }
   0x4   :  { %v2250_v8 = vld [vmem:[%s3182_s0 + $0x244] ss:$12 sps:$4 sm:$0xff]   ;;  %1011 = vmatprep.mubr.bf16.mxu0 %v2247_v6  ;;  %v2239_v13 = vld [vmem:[%s3181_s1 + $0x68] sm:$0xff]   ;;  %v2241_v15 = vld [vmem:[%s3181_s1 + $0x58] sm:$0xff]  }
   0x5   :  { %1203 = vmatprep.mubr.bf16.mxu1 %v2250_v8  ;;  %v2236_v10 = vld [vmem:[%s3181_s1] sm:$0xff]   ;;  %v2238_v12 = vld [vmem:[%s3181_s1 + $0x70] sm:$0xff]   ;;  %v2243_v17 = vld [vmem:[%s3181_s1 + $0x48] sm:$0xff]  }
   0x6   :  { %982 = vmatpush1.bf16.msra.mxu0 %v2230_v2  ;;  %2213 = vmatpush1.bf16.msra.mxu1 %v2230_v2  ;;  %v2240_v14 = vld [vmem:[%s3181_s1 + $0x60] sm:$0xff]   ;;  %v2242_v16 = vld [vmem:[%s3181_s1 + $0x50] sm:$0xff]   ;;  %v2251_v19 = vld [vmem:[%s3181_s1 + $0xb8] sm:$0xff]  }
   0x7   :  { %983 = vmatprep.subr.bf16.mxu0 %v2381_v0  ;;  %2198 = vmatprep.subr.bf16.mxu1 %v2381_v0  ;;  %v2244_v18 = vld [vmem:[%s3181_s1 + $0x40] sm:$0xff]   ;;  %v2252_v22 = vld [vmem:[%s3182_s0 + $0x1c] ss:$12 sps:$4 sm:$0xff]   ;;  %v2258_v24 = vld [vmem:[%s3181_s1 + $0xb0] sm:$0xff]  }
   0x8   :  { %v2245_v20 = vld [vmem:[%s3182_s0] ss:$12 sps:$4 sm:$0xff]   ;;  %v2254_v23 = vld [vmem:[%s3182_s0 + $0x25c] ss:$12 sps:$4 sm:$0xff]   ;;  %v2256_v26 = vld [vmem:[%s3182_s0 + $0x18] ss:$12 sps:$4 sm:$0xff]  }
   0x9   :  { %v2248_v21 = vld [vmem:[%s3182_s0 + $0x240] ss:$12 sps:$4 sm:$0xff]   ;;  %v2257_v27 = vld [vmem:[%s3182_s0 + $0x258] ss:$12 sps:$4 sm:$0xff]   ;;  %v2263_v31 = vld [vmem:[%s3182_s0 + $0x30] ss:$12 sps:$4 sm:$0xff]  }
   0xa   :  { %984 = vmatpush1.bf16.msra.mxu0 %v2231_v3  ;;  %2214 = vmatpush1.bf16.msra.mxu1 %v2231_v3  ;;  %v2265_v25 = vld [vmem:[%s3181_s1 + $0xa8] sm:$0xff]   ;;  %v2259_v28 = vld [vmem:[%s3182_s0 + $0x34] ss:$12 sps:$4 sm:$0xff]   ;;  %v2279_v32 = vld [vmem:[%s3181_s1 + $0x98] sm:$0xff]  }
   0xb   :  { %985 = vmatprep.subr.bf16.mxu0 %v2381_v0  ;;  %2199 = vmatprep.subr.bf16.mxu1 %v2381_v0  ;;  %v2261_v29 = vld [vmem:[%s3182_s0 + $0x274] ss:$12 sps:$4 sm:$0xff]   ;;  %v2264_v33 = vld [vmem:[%s3182_s0 + $0x270] ss:$12 sps:$4 sm:$0xff]   ;;  %v2266_v34 = vld [vmem:[%s3182_s0 + $0x4c] ss:$12 sps:$4 sm:$0xff]  }
   0xc   :  { %v2272_v30 = vld [vmem:[%s3181_s1 + $0xa0] sm:$0xff]   ;;  %v2268_v35 = vld [vmem:[%s3182_s0 + $0x28c] ss:$12 sps:$4 sm:$0xff]   ;;  %v2286_v36 = vld [vmem:[%s3181_s1 + $0x90] sm:$0xff]  }
   0xd   :  { %v2270_v37 = vld [vmem:[%s3182_s0 + $0x48] ss:$12 sps:$4 sm:$0xff]   ;;  %v2273_v39 = vld [vmem:[%s3182_s0 + $0x64] ss:$12 sps:$4 sm:$0xff]   ;;  %v2277_v43 = vld [vmem:[%s3182_s0 + $0x60] ss:$12 sps:$4 sm:$0xff]  }
   0xe   :  { %986 = vmatpush1.bf16.msra.mxu0 %v2232_v4  ;;  %2215 = vmatpush1.bf16.msra.mxu1 %v2232_v4  ;;  %v2271_v38 = vld [vmem:[%s3182_s0 + $0x288] ss:$12 sps:$4 sm:$0xff]   ;;  %v2275_v40 = vld [vmem:[%s3182_s0 + $0x2a4] ss:$12 sps:$4 sm:$0xff]   ;;  %v2278_v44 = vld [vmem:[%s3182_s0 + $0x2a0] ss:$12 sps:$4 sm:$0xff]  }
   0xf   :  { %987 = vmatprep.subr.bf16.mxu0 %v2381_v0  ;;  %2200 = vmatprep.subr.bf16.mxu1 %v2381_v0  ;;  %v2293_v41 = vld [vmem:[%s3181_s1 + $0x88] sm:$0xff]   ;;  %v2300_v42 = vld [vmem:[%s3181_s1 + $0x80] sm:$0xff]   ;;  %v2291_v51 = vld [vmem:[%s3182_s0 + $0x90] ss:$12 sps:$4 sm:$0xff]  }
  0x10   :  { %v2280_v45 = vld [vmem:[%s3182_s0 + $0x7c] ss:$12 sps:$4 sm:$0xff]   ;;  %v2284_v47 = vld [vmem:[%s3182_s0 + $0x78] ss:$12 sps:$4 sm:$0xff]   ;;  %v2287_v49 = vld [vmem:[%s3182_s0 + $0x94] ss:$12 sps:$4 sm:$0xff]  }
  0x11   :  { %v2282_v46 = vld [vmem:[%s3182_s0 + $0x2bc] ss:$12 sps:$4 sm:$0xff]   ;;  %v2285_v48 = vld [vmem:[%s3182_s0 + $0x2b8] ss:$12 sps:$4 sm:$0xff]   ;;  %v2289_v50 = vld [vmem:[%s3182_s0 + $0x2d4] ss:$12 sps:$4 sm:$0xff]  }
  0x12   :  { %988 = vmatpush1.bf16.msra.mxu0 %v2233_v5  ;;  %2216 = vmatpush1.bf16.msra.mxu1 %v2233_v5  ;;  %v2292_v52 = vld [vmem:[%s3182_s0 + $0x2d0] ss:$12 sps:$4 sm:$0xff]   ;;  %v2294_v53 = vld [vmem:[%s3182_s0 + $0xac] ss:$12 sps:$4 sm:$0xff]   ;;  %v2298_v55 = vld [vmem:[%s3182_s0 + $0xa8] ss:$12 sps:$4 sm:$0xff]  }
  0x13   :  { %989 = vmatprep.subr.bf16.mxu0 %v2381_v0  ;;  %2201 = vmatprep.subr.bf16.mxu1 %v2381_v0  ;;  %v2296_v54 = vld [vmem:[%s3182_s0 + $0x2ec] ss:$12 sps:$4 sm:$0xff]   ;;  %v2299_v56 = vld [vmem:[%s3182_s0 + $0x2e8] ss:$12 sps:$4 sm:$0xff]   ;;  %v2301_v57 = vld [vmem:[%s3182_s0 + $0xc4] ss:$12 sps:$4 sm:$0xff]  }
  0x14   :  { %v2303_v58 = vld [vmem:[%s3182_s0 + $0x8] ss:$12 sps:$4 sm:$0xff]   ;;  %v2304_v59 = vld [vmem:[%s3182_s0 + $0xc0] ss:$12 sps:$4 sm:$0xff]   ;;  %v2308_v62 = vld [vmem:[%s3182_s0 + $0x38] ss:$12 sps:$4 sm:$0xff]  }
  0x15   :  { %v2305_v60 = vld [vmem:[%s3182_s0 + $0x20] ss:$12 sps:$4 sm:$0xff]   ;;  %v2306_v61 = vld [vmem:[%s3182_s0 + $0xdc] ss:$12 sps:$4 sm:$0xff]   ;;  %v2309_v63 = vld [vmem:[%s3182_s0 + $0xd8] ss:$12 sps:$4 sm:$0xff]  }
  0x16   :  { %990 = vmatpush1.bf16.msra.mxu0 %v2234_v7  ;;  %2217 = vmatpush1.bf16.msra.mxu1 %v2234_v7  ;;  %v2311_v1 = vld [vmem:[%s3182_s0 + $0xf4] ss:$12 sps:$4 sm:$0xff]   ;;  %v2314_v3 = vld [vmem:[%s3182_s0 + $0xf0] ss:$12 sps:$4 sm:$0xff]   ;;  %v2316_v5 = vld [vmem:[%s3182_s0 + $0x10c] ss:$12 sps:$4 sm:$0xff]  }
  0x17   :  { %991 = vmatprep.subr.bf16.mxu0 %v2381_v0  ;;  %2202 = vmatprep.subr.bf16.mxu1 %v2381_v0  ;;  %v2313_v2 = vld [vmem:[%s3182_s0 + $0x68] ss:$12 sps:$4 sm:$0xff]   ;;  %v2315_v4 = vld [vmem:[%s3182_s0 + $0x80] ss:$12 sps:$4 sm:$0xff]   ;;  %v2318_v6 = vld [vmem:[%s3182_s0 + $0x98] ss:$12 sps:$4 sm:$0xff]  }
  0x18   :  { %v2319_v7 = vld [vmem:[%s3182_s0 + $0x108] ss:$12 sps:$4 sm:$0xff]   ;;  %v2320_v8 = vld [vmem:[%s3182_s0 + $0xb0] ss:$12 sps:$4 sm:$0xff]  }
  0x1a   :  { %992 = vmatpush1.bf16.msra.mxu0 %v2235_v9  ;;  %2218 = vmatpush1.bf16.msra.mxu1 %v2235_v9  ;;  %v2321_v9 = vld [vmem:[%s3182_s0 + $0x124] ss:$12 sps:$4 sm:$0xff]  }
  0x1b   :  { %993 = vmatprep.subr.bf16.mxu0 %v2381_v0  ;;  %2203 = vmatprep.subr.bf16.mxu1 %v2381_v0 }
  0x1e   :  { %994 = vmatpush1.bf16.msra.mxu0 %v2236_v10  ;;  %2219 = vmatpush1.bf16.msra.mxu1 %v2236_v10  ;;  %v2323_v10 = vld [vmem:[%s3182_s0 + $0xc8] ss:$12 sps:$4 sm:$0xff]  }
  0x1f   :  { %995 = vmatprep.subr.bf16.mxu0 %v2381_v0  ;;  %2204 = vmatprep.subr.bf16.mxu1 %v2381_v0 }
  0x22   :  { %996 = vmatpush2.bf16.msra.mxu0 %v2237_v11  ;;  %2220 = vmatpush2.bf16.msra.mxu1 %v2237_v11  ;;  %v2324_v11 = vld [vmem:[%s3182_s0 + $0x120] ss:$12 sps:$4 sm:$0xff]  }
  0x23   :  { %997 = vmatprep.subr.bf16.mxu0 %v2381_v0  ;;  %2205 = vmatprep.subr.bf16.mxu1 %v2381_v0 }
  0x26   :  { %998 = vmatpush2.bf16.msra.mxu0 %v2238_v12  ;;  %2221 = vmatpush2.bf16.msra.mxu1 %v2238_v12  ;;  %v2325_v12 = vld [vmem:[%s3182_s0 + $0xe0] ss:$12 sps:$4 sm:$0xff]  }
  0x27   :  { %999 = vmatprep.subr.bf16.mxu0 %v2381_v0  ;;  %2206 = vmatprep.subr.bf16.mxu1 %v2381_v0 }
  0x2a   :  { %1000 = vmatpush2.bf16.msra.mxu0 %v2239_v13  ;;  %2222 = vmatpush2.bf16.msra.mxu1 %v2239_v13  ;;  %v2326_v13 = vld [vmem:[%s3182_s0 + $0x13c] ss:$12 sps:$4 sm:$0xff]  }
  0x2b   :  { %1001 = vmatprep.subr.bf16.mxu0 %v2381_v0  ;;  %2207 = vmatprep.subr.bf16.mxu1 %v2381_v0 }
  0x2e   :  { %1002 = vmatpush2.bf16.msra.mxu0 %v2240_v14  ;;  %2223 = vmatpush2.bf16.msra.mxu1 %v2240_v14  ;;  %v2328_v14 = vld [vmem:[%s3182_s0 + $0xf8] ss:$12 sps:$4 sm:$0xff]  }
  0x2f   :  { %1003 = vmatprep.subr.bf16.mxu0 %v2381_v0  ;;  %2208 = vmatprep.subr.bf16.mxu1 %v2381_v0 }
  0x32   :  { %1004 = vmatpush2.bf16.msra.mxu0 %v2241_v15  ;;  %2224 = vmatpush2.bf16.msra.mxu1 %v2241_v15  ;;  %v2329_v15 = vld [vmem:[%s3182_s0 + $0x138] ss:$12 sps:$4 sm:$0xff]  }
  0x33   :  { %1005 = vmatprep.subr.bf16.mxu0 %v2381_v0  ;;  %2209 = vmatprep.subr.bf16.mxu1 %v2381_v0 }
  0x36   :  { %1006 = vmatpush2.bf16.msra.mxu0 %v2242_v16  ;;  %2225 = vmatpush2.bf16.msra.mxu1 %v2242_v16  ;;  %v2330_v16 = vld [vmem:[%s3182_s0 + $0x110] ss:$12 sps:$4 sm:$0xff]  }
  0x37   :  { %1007 = vmatprep.subr.bf16.mxu0 %v2381_v0  ;;  %2210 = vmatprep.subr.bf16.mxu1 %v2381_v0 }
  0x3a   :  { %1008 = vmatpush2.bf16.msra.mxu0 %v2243_v17  ;;  %2226 = vmatpush2.bf16.msra.mxu1 %v2243_v17  ;;  %v2331_v17 = vld [vmem:[%s3182_s0 + $0x154] ss:$12 sps:$4 sm:$0xff]  }
  0x3b   :  { %1009 = vmatprep.subr.bf16.mxu0 %v2381_v0  ;;  %2211 = vmatprep.subr.bf16.mxu1 %v2381_v0  ;;  %v2310_v0 = vld [vmem:[%s3182_s0 + $0x50] ss:$12 sps:$4 sm:$0xff]  }
  0x3e   :  { %1010 = vmatpush2.bf16.msra.mxu0 %v2244_v18  ;;  %2227 = vmatpush2.bf16.msra.mxu1 %v2244_v18  ;;  %v2333_v18 = vld [vmem:[%s3182_s0 + $0x128] ss:$12 sps:$4 sm:$0xff]  }
  0x3f   :  { %2116 = vmatprep.subr.bf16.mxu1 %v2251_v19 }
  0x41   :  { %1012 = vmatmul.mubr.bf16.vlgmr.msra.gmra.mxu0 %v2245_v20  ;;  %1204 = vmatmul.mubr.bf16.vlgmr.msra.gmra.mxu1 %v2248_v21  ;;  %v2335_v20 = vld [vmem:[%s3182_s0 + $0x140] ss:$12 sps:$4 sm:$0xff]  }
  0x42   :  { %2117 = vmatpush3.bf16.msra.mxu1 %v2251_v19  ;;  %1019 = vmatprep.mubr.bf16.mxu0 %v2252_v22  ;;  %v2334_v19 = vld [vmem:[%s3182_s0 + $0x150] ss:$12 sps:$4 sm:$0xff]   ;;  %v2336_v21 = vld [vmem:[%s3182_s0 + $0x16c] ss:$12 sps:$4 sm:$0xff]  }
  0x43   :  { %1211 = vmatprep.mubr.bf16.mxu1 %v2254_v23  ;;  %2118 = vmatprep.subr.bf16.mxu1 %v2258_v24  ;;  %v2338_v22 = vld [vmem:[%s3182_s0 + $0x158] ss:$12 sps:$4 sm:$0xff]   ;;  %v2339_v23 = vld [vmem:[%s3182_s0 + $0x168] ss:$12 sps:$4 sm:$0xff]  }
  0x46   :  { %2119 = vmatpush3.bf16.msra.mxu1 %v2258_v24  ;;  %v2340_v24 = vld [vmem:[%s3182_s0 + $0x170] ss:$12 sps:$4 sm:$0xff]  }
  0x47   :  { %2120 = vmatprep.subr.bf16.mxu1 %v2265_v25 }
  0x49   :  { %1020 = vmatmul.mubr.bf16.gmra.mxu0 %v2256_v26  ;;  %1212 = vmatmul.mubr.bf16.gmra.mxu1 %v2257_v27  ;;  %v2343_v26 = vld [vmem:[%s3182_s0 + $0x188] ss:$12 sps:$4 sm:$0xff]   ;;  %v2344_v27 = vld [vmem:[%s3182_s0 + $0x180] ss:$12 sps:$4 sm:$0xff]  }
  0x4a   :  { %1027 = vmatprep.mubr.bf16.mxu0 %v2259_v28  ;;  %1219 = vmatprep.mubr.bf16.mxu1 %v2261_v29  ;;  %v2345_v28 = vld [vmem:[%s3182_s0 + $0x1a0] ss:$12 sps:$4 sm:$0xff]   ;;  %v2346_v29 = vld [vmem:[%s3182_s0 + $0x19c] ss:$12 sps:$4 sm:$0xff]  }
  0x4b   :  { %2121 = vmatpush3.bf16.msra.mxu1 %v2265_v25  ;;  %v2341_v25 = vld [vmem:[%s3182_s0 + $0x184] ss:$12 sps:$4 sm:$0xff]  }
  0x4c   :  { %2122 = vmatprep.subr.bf16.mxu1 %v2272_v30 }
  0x4f   :  { %2123 = vmatpush3.bf16.msra.mxu1 %v2272_v30  ;;  %v2348_v30 = vld [vmem:[%s3182_s0 + $0x1b8] ss:$12 sps:$4 sm:$0xff]  }
  0x50   :  { %2124 = vmatprep.subr.bf16.mxu1 %v2279_v32 }
  0x51   :  { %1028 = vmatmul.mubr.bf16.gmra.mxu0 %v2263_v31  ;;  %1220 = vmatmul.mubr.bf16.gmra.mxu1 %v2264_v33  ;;  %v2349_v31 = vld [vmem:[%s3182_s0 + $0x198] ss:$12 sps:$4 sm:$0xff]   ;;  %v2351_v33 = vld [vmem:[%s3182_s0 + $0x1b4] ss:$12 sps:$4 sm:$0xff]  }
  0x52   :  { %1035 = vmatprep.mubr.bf16.mxu0 %v2266_v34  ;;  %1227 = vmatprep.mubr.bf16.mxu1 %v2268_v35  ;;  %v2353_v34 = vld [vmem:[%s3182_s0 + $0x1e8] ss:$12 sps:$4 sm:$0xff]   ;;  %v2354_v35 = vld [vmem:[%s3182_s0 + $0x1b0] ss:$12 sps:$4 sm:$0xff]  }
  0x53   :  { %2125 = vmatpush3.bf16.msra.mxu1 %v2279_v32  ;;  %v2350_v32 = vld [vmem:[%s3182_s0 + $0x1d0] ss:$12 sps:$4 sm:$0xff]  }
  0x54   :  { %2126 = vmatprep.subr.bf16.mxu1 %v2286_v36 }
  0x57   :  { %2127 = vmatpush3.bf16.msra.mxu1 %v2286_v36  ;;  %v2355_v36 = vld [vmem:[%s3182_s0 + $0x200] ss:$12 sps:$4 sm:$0xff]  }
  0x58   :  { %2128 = vmatprep.subr.bf16.mxu1 %v2293_v41 }
  0x59   :  { %1036 = vmatmul.mubr.bf16.gmra.mxu0 %v2270_v37  ;;  %1228 = vmatmul.mubr.bf16.gmra.mxu1 %v2271_v38  ;;  %v2356_v37 = vld [vmem:[%s3182_s0 + $0x1cc] ss:$12 sps:$4 sm:$0xff]  }
  0x5a   :  { %1043 = vmatprep.mubr.bf16.mxu0 %v2273_v39  ;;  %1235 = vmatprep.mubr.bf16.mxu1 %v2275_v40  ;;  %v2358_v38 = vld [vmem:[%s3182_s0 + $0x218] ss:$12 sps:$4 sm:$0xff]   ;;  %v2359_v39 = vld [vmem:[%s3182_s0 + $0x1c8] ss:$12 sps:$4 sm:$0xff]   ;;  %v2360_v40 = vld [vmem:[%s3182_s0 + $0x230] ss:$12 sps:$4 sm:$0xff]  }
  0x5b   :  { %2129 = vmatpush3.bf16.msra.mxu1 %v2293_v41  ;;  %v2361_v41 = vld [vmem:[%s3182_s0 + $0x1e4] ss:$12 sps:$4 sm:$0xff]  }
  0x5c   :  { %2130 = vmatprep.subr.bf16.mxu1 %v2300_v42 }
  0x5f   :  { %2131 = vmatpush3.bf16.msra.mxu1 %v2300_v42  ;;  %v2363_v42 = vld [vmem:[%s3182_s0 + $0x248] ss:$12 sps:$4 sm:$0xff]  }
  0x61   :  { %1044 = vmatmul.mubr.bf16.gmra.mxu0 %v2277_v43  ;;  %1236 = vmatmul.mubr.bf16.gmra.mxu1 %v2278_v44  ;;  %v2364_v43 = vld [vmem:[%s3182_s0 + $0x1e0] ss:$12 sps:$4 sm:$0xff]  }
  0x62   :  { %1051 = vmatprep.mubr.bf16.mxu0 %v2280_v45  ;;  %1243 = vmatprep.mubr.bf16.mxu1 %v2282_v46  ;;  %v2365_v44 = vld [vmem:[%s3182_s0 + $0x260] ss:$12 sps:$4 sm:$0xff]   ;;  %v2366_v45 = vld [vmem:[%s3182_s0 + $0x1fc] ss:$12 sps:$4 sm:$0xff]   ;;  %v2368_v46 = vld [vmem:[%s3182_s0 + $0x278] ss:$12 sps:$4 sm:$0xff]  }
  0x69   :  { %1052 = vmatmul.mubr.bf16.gmra.mxu0 %v2284_v47  ;;  %1244 = vmatmul.mubr.bf16.gmra.mxu1 %v2285_v48  ;;  %v2369_v47 = vld [vmem:[%s3182_s0 + $0x1f8] ss:$12 sps:$4 sm:$0xff]   ;;  %v2370_v48 = vld [vmem:[%s3182_s0 + $0x290] ss:$12 sps:$4 sm:$0xff]  }
  0x6a   :  { %1059 = vmatprep.mubr.bf16.mxu0 %v2287_v49  ;;  %1251 = vmatprep.mubr.bf16.mxu1 %v2289_v50  ;;  %v2371_v49 = vld [vmem:[%s3182_s0 + $0x214] ss:$12 sps:$4 sm:$0xff]  }
  0x6b   :  { %v2373_v50 = vld [vmem:[%s3182_s0 + $0x2a8] ss:$12 sps:$4 sm:$0xff]  }
  0x71   :  { %1060 = vmatmul.mubr.bf16.gmra.mxu0 %v2291_v51  ;;  %1252 = vmatmul.mubr.bf16.gmra.mxu1 %v2292_v52  ;;  %v2374_v51 = vld [vmem:[%s3182_s0 + $0x210] ss:$12 sps:$4 sm:$0xff]   ;;  %v2375_v52 = vld [vmem:[%s3182_s0 + $0x2c0] ss:$12 sps:$4 sm:$0xff]  }
  0x72   :  { %1067 = vmatprep.mubr.bf16.mxu0 %v2294_v53  ;;  %1259 = vmatprep.mubr.bf16.mxu1 %v2296_v54  ;;  %v2376_v53 = vld [vmem:[%s3182_s0 + $0x22c] ss:$12 sps:$4 sm:$0xff]  }
  0x73   :  { %v2378_v54 = vld [vmem:[%s3182_s0 + $0x2d8] ss:$12 sps:$4 sm:$0xff]  }
  0x79   :  { %1068 = vmatmul.mubr.bf16.gmra.mxu0 %v2298_v55  ;;  %1260 = vmatmul.mubr.bf16.gmra.mxu1 %v2299_v56  ;;  %v2379_v55 = vld [vmem:[%s3182_s0 + $0x228] ss:$12 sps:$4 sm:$0xff]   ;;  %v2380_v56 = vld [vmem:[%s3182_s0 + $0x2f0] ss:$12 sps:$4 sm:$0xff]  }
  0x7a   :  { %1075 = vmatprep.mubr.bf16.mxu0 %v2301_v57  ;;  %2132 = vmatprep.mubr.bf16.mxu1 %v2303_v58 }
  0x81   :  { %1076 = vmatmul.mubr.bf16.gmra.mxu0 %v2304_v59  ;;  %2133 = vmatmul.mubr.bf16.vlgmr.msra.gmra.mxu1 %v2305_v60 }
  0x82   :  { %1083 = vmatprep.mubr.bf16.mxu0 %v2306_v61  ;;  %2136 = vmatprep.mubr.bf16.mxu1 %v2308_v62 }
  0x89   :  { %1084 = vmatmul.mubr.bf16.gmra.mxu0 %v2309_v63  ;;  %2137 = vmatmul.mubr.bf16.gmra.mxu1 %v2310_v0 }
  0x8a   :  { %1091 = vmatprep.mubr.bf16.mxu0 %v2311_v1  ;;  %2140 = vmatprep.mubr.bf16.mxu1 %v2313_v2 }
  0x91   :  { %1092 = vmatmul.mubr.bf16.gmra.mxu0 %v2314_v3  ;;  %2141 = vmatmul.mubr.bf16.gmra.mxu1 %v2315_v4 }
  0x92   :  { %1099 = vmatprep.mubr.bf16.mxu0 %v2316_v5  ;;  %2144 = vmatprep.mubr.bf16.mxu1 %v2318_v6 }
  0x99   :  { %1100 = vmatmul.mubr.bf16.gmra.mxu0 %v2319_v7  ;;  %2145 = vmatmul.mubr.bf16.gmra.mxu1 %v2320_v8 }
  0x9a   :  { %1107 = vmatprep.mubr.bf16.mxu0 %v2321_v9  ;;  %2148 = vmatprep.mubr.bf16.mxu1 %v2323_v10 }
  0xa1   :  { %1108 = vmatmul.mubr.bf16.gmra.mxu0 %v2324_v11  ;;  %2149 = vmatmul.mubr.bf16.gmra.mxu1 %v2325_v12 }
  0xa2   :  { %1115 = vmatprep.mubr.bf16.mxu0 %v2326_v13  ;;  %2152 = vmatprep.mubr.bf16.mxu1 %v2328_v14 }
  0xa9   :  { %1116 = vmatmul.mubr.bf16.gmra.mxu0 %v2329_v15  ;;  %2153 = vmatmul.mubr.bf16.gmra.mxu1 %v2330_v16 }
  0xaa   :  { %1123 = vmatprep.mubr.bf16.mxu0 %v2331_v17  ;;  %2156 = vmatprep.mubr.bf16.mxu1 %v2333_v18 }
  0xb1   :  { %1124 = vmatmul.mubr.bf16.gmra.mxu0 %v2334_v19  ;;  %2157 = vmatmul.mubr.bf16.gmra.mxu1 %v2335_v20 }
  0xb2   :  { %1131 = vmatprep.mubr.bf16.mxu0 %v2336_v21  ;;  %2160 = vmatprep.mubr.bf16.mxu1 %v2338_v22 }
  0xb9   :  { %1132 = vmatmul.mubr.bf16.gmra.mxu0 %v2339_v23  ;;  %2161 = vmatmul.mubr.bf16.gmra.mxu1 %v2340_v24 }
  0xba   :  { %1139 = vmatprep.mubr.bf16.mxu0 %v2341_v25  ;;  %2164 = vmatprep.mubr.bf16.mxu1 %v2343_v26 }
  0xc1   :  { %1140 = vmatmul.mubr.bf16.gmra.mxu0 %v2344_v27  ;;  %2165 = vmatmul.mubr.bf16.gmra.mxu1 %v2345_v28 }
  0xc2   :  { %1147 = vmatprep.mubr.bf16.mxu0 %v2346_v29  ;;  %2168 = vmatprep.mubr.bf16.mxu1 %v2348_v30 }
  0xc9   :  { %1148 = vmatmul.mubr.bf16.gmra.mxu0 %v2349_v31  ;;  %2169 = vmatmul.mubr.bf16.gmra.mxu1 %v2350_v32 }
  0xca   :  { %1155 = vmatprep.mubr.bf16.mxu0 %v2351_v33  ;;  %2172 = vmatprep.mubr.bf16.mxu1 %v2353_v34 }
  0xd1   :  { %1156 = vmatmul.mubr.bf16.gmra.mxu0 %v2354_v35  ;;  %2173 = vmatmul.mubr.bf16.gmra.mxu1 %v2355_v36 }
  0xd2   :  { %1163 = vmatprep.mubr.bf16.mxu0 %v2356_v37  ;;  %2176 = vmatprep.mubr.bf16.mxu1 %v2358_v38 }
  0xd9   :  { %1164 = vmatmul.mubr.bf16.gmra.mxu0 %v2359_v39  ;;  %2177 = vmatmul.mubr.bf16.gmra.mxu1 %v2360_v40 }
  0xda   :  { %1171 = vmatprep.mubr.bf16.mxu0 %v2361_v41  ;;  %2180 = vmatprep.mubr.bf16.mxu1 %v2363_v42 }
  0xe1   :  { %1172 = vmatmul.mubr.bf16.gmra.mxu0 %v2364_v43  ;;  %2181 = vmatmul.mubr.bf16.gmra.mxu1 %v2365_v44 }
  0xe2   :  { %1179 = vmatprep.mubr.bf16.mxu0 %v2366_v45  ;;  %2184 = vmatprep.mubr.bf16.mxu1 %v2368_v46 }
  0xe9   :  { %1180 = vmatmul.mubr.bf16.gmra.mxu0 %v2369_v47  ;;  %2185 = vmatmul.mubr.bf16.gmra.mxu1 %v2370_v48 }
  0xea   :  { %1187 = vmatprep.mubr.bf16.mxu0 %v2371_v49  ;;  %2188 = vmatprep.mubr.bf16.mxu1 %v2373_v50 }
  0xf1   :  { %1188 = vmatmul.mubr.bf16.gmra.mxu0 %v2374_v51  ;;  %2189 = vmatmul.mubr.bf16.gmra.mxu1 %v2375_v52 }
  0xf2   :  { %1195 = vmatprep.mubr.bf16.mxu0 %v2376_v53  ;;  %2192 = vmatprep.mubr.bf16.mxu1 %v2378_v54 }
  0xf9   :  { %1196 = vmatmul.mubr.bf16.gmra.mxu0 %v2379_v55  ;;  %2193 = vmatmul.mubr.bf16.gmra.mxu1 %v2380_v56 }
 0x101   :  { %v2794_v57 = vpop.f32.mrf.mxu0  ;;  %v2796_v58 = vpop.f32.mrf.mxu1 }
 0x103   :  { %v1015_v59 = vpop.f32.mrf.mxu0  ;;  %v1207_v60 = vpop.f32.mrf.mxu1 }
 0x105   :  { %v2798_v61 = vpop.f32.mrf.mxu0  ;;  %v2800_v62 = vpop.f32.mrf.mxu1 }
 0x107   :  { %v1018_v63 = vpop.f32.mrf.mxu0  ;;  %v1210_v0 = vpop.f32.mrf.mxu1 }
 0x108   :  { %v2861_v63 = vld [vmem:[%s3183_s2] ss:$0 sm:$0xff] }
 0x109   :  { %v1021_v1 = vpop.f32.mrf.mxu0  ;;  %v2802_v2 = vpop.f32.mrf.mxu1 }
 0x10b   :  { %v1023_v3 = vpop.f32.mrf.mxu0  ;;  %v1215_v4 = vpop.f32.mrf.mxu1 }
 0x10d   :  { %v2804_v5 = vpop.f32.mrf.mxu0  ;;  %v2806_v6 = vpop.f32.mrf.mxu1 }
 0x10f   :  { %v1026_v7 = vpop.f32.mrf.mxu0  ;;  %v1218_v8 = vpop.f32.mrf.mxu1 }
 0x111   :  { %v2808_v9 = vpop.f32.mrf.mxu0  ;;  %v2810_v10 = vpop.f32.mrf.mxu1 }
 0x113   :  { %v1031_v11 = vpop.f32.mrf.mxu0  ;;  %v1223_v12 = vpop.f32.mrf.mxu1 }
 0x115   :  { %v2812_v13 = vpop.f32.mrf.mxu0  ;;  %v2814_v14 = vpop.f32.mrf.mxu1 }
 0x117   :  { %v1034_v15 = vpop.f32.mrf.mxu0  ;;  %v1226_v16 = vpop.f32.mrf.mxu1 }
 0x119   :  { %v2816_v17 = vpop.f32.mrf.mxu0  ;;  %v2818_v18 = vpop.f32.mrf.mxu1 }
 0x11b   :  { %v1039_v19 = vpop.f32.mrf.mxu0  ;;  %v1231_v20 = vpop.f32.mrf.mxu1 }
 0x11d   :  { %v2820_v21 = vpop.f32.mrf.mxu0  ;;  %v2822_v22 = vpop.f32.mrf.mxu1 }
 0x11f   :  { %v1042_v23 = vpop.f32.mrf.mxu0  ;;  %v1234_v24 = vpop.f32.mrf.mxu1 }
 0x121   :  { %v2824_v25 = vpop.f32.mrf.mxu0  ;;  %v2826_v26 = vpop.f32.mrf.mxu1 }
 0x123   :  { %v1047_v27 = vpop.f32.mrf.mxu0  ;;  %v1239_v28 = vpop.f32.mrf.mxu1 }
 0x125   :  { %v2828_v29 = vpop.f32.mrf.mxu0  ;;  %v2830_v30 = vpop.f32.mrf.mxu1 }
 0x127   :  { %v1050_v31 = vpop.f32.mrf.mxu0  ;;  %v1242_v32 = vpop.f32.mrf.mxu1 }
 0x129   :  { %v2832_v33 = vpop.f32.mrf.mxu0  ;;  %v2834_v34 = vpop.f32.mrf.mxu1 }
 0x12b   :  { %v1055_v35 = vpop.f32.mrf.mxu0  ;;  %v1247_v36 = vpop.f32.mrf.mxu1 }
 0x12d   :  { %v2836_v37 = vpop.f32.mrf.mxu0  ;;  %v2838_v38 = vpop.f32.mrf.mxu1 }
 0x12f   :  { %v1058_v39 = vpop.f32.mrf.mxu0  ;;  %v1250_v40 = vpop.f32.mrf.mxu1 }
 0x131   :  { %v2840_v41 = vpop.f32.mrf.mxu0  ;;  %v2842_v42 = vpop.f32.mrf.mxu1 }
 0x133   :  { %v1063_v43 = vpop.f32.mrf.mxu0  ;;  %v1255_v44 = vpop.f32.mrf.mxu1 }
 0x135   :  { %v2844_v45 = vpop.f32.mrf.mxu0  ;;  %v2846_v46 = vpop.f32.mrf.mxu1 }
 0x137   :  { %v1066_v47 = vpop.f32.mrf.mxu0  ;;  %v1258_v48 = vpop.f32.mrf.mxu1 }
 0x139   :  { %v2848_v49 = vpop.f32.mrf.mxu0  ;;  %v2850_v50 = vpop.f32.mrf.mxu1 }
 0x13b   :  { %v1071_v51 = vpop.f32.mrf.mxu0  ;;  %v1263_v52 = vpop.f32.mrf.mxu1 }
 0x13d   :  { %v2852_v53 = vpop.f32.mrf.mxu0  ;;  %v2854_v54 = vpop.f32.mrf.mxu1 }
 0x13f   :  { %v1074_v55 = vpop.f32.mrf.mxu0  ;;  %v1266_v56 = vpop.f32.mrf.mxu1 }
 0x141   :  { %v2856_v59 = vpop.f32.mrf.mxu0  ;;  %v2134_v60 = vpop.f32.mrf.mxu1 }
 0x142   :  { %v1311_v0 = vadd.f32 %v2134_v60, %v1021_v1 }
 0x143   :  { %v1079_v3 = vpop.f32.mrf.mxu0  ;;  %v1302_v4 = vpop.f32.mrf.mxu1 }
 0x144   :  { %v1761_v7 = vadd.f32 %v2861_v63, %v1311_v0  ;;  %v1303_v8 = vadd.f32 %v1302_v4, %v2794_v57 }
 0x145   :  { %v2865_v11 = vpop.f32.mrf.mxu0  ;;  %v2135_v12 = vpop.f32.mrf.mxu1 }
 0x146   :  { %v1825_v15 = vmax.f32 %v1761_v7, 0.0  ;;  %v1759_v16 = vadd.f32 %v2861_v63, %v1303_v8  ;;  %v1314_v19 = vadd.f32 %v2135_v12, %v2804_v5 }
 0x147   :  { %v1082_v20 = vpop.f32.mrf.mxu0  ;;  %v1305_v23 = vpop.f32.mrf.mxu1 }
 0x148   :  { %1889 = vst [vmem:[%s3184_s3 + $0x10] sm:$0xff] %v1825_v15  ;;  %v1823_v1 = vmax.f32 %v1759_v16, 0.0  ;;  %v1762_v24 = vadd.f32 %v2861_v63, %v1314_v19  ;;  %v1306_v27 = vadd.f32 %v1305_v23, %v2798_v61 }
 0x149   :  { %v2874_v57 = vpop.f32.mrf.mxu0  ;;  %v2138_v28 = vpop.f32.mrf.mxu1 }
 0x14a   :  { %1887 = vst [vmem:[%s3184_s3] sm:$0xff] %v1823_v1  ;;  %v1826_v31 = vmax.f32 %v1762_v24, 0.0  ;;  %v1760_v5 = vadd.f32 %v2861_v63, %v1306_v27  ;;  %v1327_v32 = vadd.f32 %v2138_v28, %v2816_v17 }
 0x14b   :  { %v1087_v35 = vpop.f32.mrf.mxu0  ;;  %v1318_v36 = vpop.f32.mrf.mxu1 }
 0x14c   :  { %1890 = vst [vmem:[%s3184_s3 + $0x18] sm:$0xff] %v1826_v31  ;;  %v1824_v39 = vmax.f32 %v1760_v5, 0.0  ;;  %v1765_v61 = vadd.f32 %v2861_v63, %v1327_v32  ;;  %v1319_v40 = vadd.f32 %v1318_v36, %v2808_v9 }
 0x14d   :  { %v2886_v43 = vpop.f32.mrf.mxu0  ;;  %v2139_v44 = vpop.f32.mrf.mxu1 }
 0x14e   :  { %1888 = vst [vmem:[%s3184_s3 + $0x8] sm:$0xff] %v1824_v39  ;;  %v1829_v47 = vmax.f32 %v1765_v61, 0.0  ;;  %v1763_v17 = vadd.f32 %v2861_v63, %v1319_v40  ;;  %v1330_v48 = vadd.f32 %v2139_v44, %v2820_v21 }
 0x14f   :  { %v1090_v51 = vpop.f32.mrf.mxu0  ;;  %v1321_v52 = vpop.f32.mrf.mxu1 }
 0x150   :  { %1893 = vst [vmem:[%s3184_s3 + $0x30] sm:$0xff] %v1829_v47  ;;  %v1827_v55 = vmax.f32 %v1763_v17, 0.0  ;;  %v1766_v9 = vadd.f32 %v2861_v63, %v1330_v48  ;;  %v1322_v56 = vadd.f32 %v1321_v52, %v2812_v13 }
 0x151   :  { %v2898_v60 = vpop.f32.mrf.mxu0  ;;  %v2142_v0 = vpop.f32.mrf.mxu1 }
 0x152   :  { %1891 = vst [vmem:[%s3184_s3 + $0x20] sm:$0xff] %v1827_v55  ;;  %v1830_v3 = vmax.f32 %v1766_v9, 0.0  ;;  %v1764_v21 = vadd.f32 %v2861_v63, %v1322_v56  ;;  %v1343_v4 = vadd.f32 %v2142_v0, %v2832_v33 }
 0x153   :  { %v1095_v7 = vpop.f32.mrf.mxu0  ;;  %v1334_v8 = vpop.f32.mrf.mxu1 }
 0x154   :  { %1894 = vst [vmem:[%s3184_s3 + $0x38] sm:$0xff] %v1830_v3  ;;  %v1828_v12 = vmax.f32 %v1764_v21, 0.0  ;;  %v1769_v13 = vadd.f32 %v2861_v63, %v1343_v4  ;;  %v1335_v15 = vadd.f32 %v1334_v8, %v2824_v25 }
 0x155   :  { %v2910_v16 = vpop.f32.mrf.mxu0  ;;  %v2143_v19 = vpop.f32.mrf.mxu1 }
 0x156   :  { %1892 = vst [vmem:[%s3184_s3 + $0x28] sm:$0xff] %v1828_v12  ;;  %v1833_v20 = vmax.f32 %v1769_v13, 0.0  ;;  %v1767_v33 = vadd.f32 %v2861_v63, %v1335_v15  ;;  %v1346_v23 = vadd.f32 %v2143_v19, %v2836_v37 }
 0x157   :  { %v1098_v1 = vpop.f32.mrf.mxu0  ;;  %v1337_v24 = vpop.f32.mrf.mxu1 }
 0x158   :  { %1897 = vst [vmem:[%s3184_s3 + $0x50] sm:$0xff] %v1833_v20  ;;  %v1831_v27 = vmax.f32 %v1767_v33, 0.0  ;;  %v1770_v25 = vadd.f32 %v2861_v63, %v1346_v23  ;;  %v1338_v28 = vadd.f32 %v1337_v24, %v2828_v29 }
 0x159   :  { %v1101_v31 = vpop.f32.mrf.mxu0  ;;  %v2146_v5 = vpop.f32.mrf.mxu1 }
 0x15a   :  { %1895 = vst [vmem:[%s3184_s3 + $0x40] sm:$0xff] %v1831_v27  ;;  %v1834_v32 = vmax.f32 %v1770_v25, 0.0  ;;  %v1768_v37 = vadd.f32 %v2861_v63, %v1338_v28  ;;  %v1359_v35 = vadd.f32 %v2146_v5, %v2848_v49 }
 0x15b   :  { %v1103_v36 = vpop.f32.mrf.mxu0  ;;  %v1350_v39 = vpop.f32.mrf.mxu1 }
 0x15c   :  { %1898 = vst [vmem:[%s3184_s3 + $0x58] sm:$0xff] %v1834_v32  ;;  %v1832_v61 = vmax.f32 %v1768_v37, 0.0  ;;  %v1773_v29 = vadd.f32 %v2861_v63, %v1359_v35  ;;  %v1351_v40 = vadd.f32 %v1350_v39, %v2840_v41 }
 0x15d   :  { %v1104_v44 = vpop.f32.mrf.mxu0  ;;  %v2147_v47 = vpop.f32.mrf.mxu1 }
 0x15e   :  { %1896 = vst [vmem:[%s3184_s3 + $0x48] sm:$0xff] %v1832_v61  ;;  %v1837_v17 = vmax.f32 %v1773_v29, 0.0  ;;  %v1771_v49 = vadd.f32 %v2861_v63, %v1351_v40  ;;  %v1362_v48 = vadd.f32 %v2147_v47, %v2852_v53 }
 0x15f   :  { %v1106_v51 = vpop.f32.mrf.mxu0  ;;  %v1353_v52 = vpop.f32.mrf.mxu1 }
 0x160   :  { %1901 = vst [vmem:[%s3184_s3 + $0x70] sm:$0xff] %v1837_v17  ;;  %v1835_v55 = vmax.f32 %v1771_v49, 0.0  ;;  %v1774_v41 = vadd.f32 %v2861_v63, %v1362_v48  ;;  %v1354_v9 = vadd.f32 %v1353_v52, %v2844_v45 }
 0x161   :  { %v1109_v56 = vpop.f32.mrf.mxu0  ;;  %v2150_v0 = vpop.f32.mrf.mxu1 }
 0x162   :  { %1899 = vst [vmem:[%s3184_s3 + $0x60] sm:$0xff] %v1835_v55  ;;  %v1838_v3 = vmax.f32 %v1774_v41, 0.0  ;;  %v1772_v53 = vadd.f32 %v2861_v63, %v1354_v9  ;;  %v1375_v21 = vadd.f32 %v2150_v0, %v2874_v57 }
 0x163   :  { %v1111_v4 = vpop.f32.mrf.mxu0  ;;  %v1366_v7 = vpop.f32.mrf.mxu1 }
 0x164   :  { %1902 = vst [vmem:[%s3184_s3 + $0x78] sm:$0xff] %v1838_v3  ;;  %v1836_v8 = vmax.f32 %v1772_v53, 0.0  ;;  %v1777_v45 = vadd.f32 %v2861_v63, %v1375_v21  ;;  %v1367_v12 = vadd.f32 %v1366_v7, %v2856_v59 }
 0x165   :  { %v1112_v13 = vpop.f32.mrf.mxu0  ;;  %v2151_v15 = vpop.f32.mrf.mxu1 }
 0x166   :  { %1900 = vst [vmem:[%s3184_s3 + $0x68] sm:$0xff] %v1836_v8  ;;  %v1841_v19 = vmax.f32 %v1777_v45, 0.0  ;;  %v1775_v57 = vadd.f32 %v2861_v63, %v1367_v12  ;;  %v1378_v20 = vadd.f32 %v2151_v15, %v2886_v43 }
 0x167   :  { %v1114_v33 = vpop.f32.mrf.mxu0  ;;  %v1369_v23 = vpop.f32.mrf.mxu1 }
 0x168   :  { %1905 = vst [vmem:[%s3184_s3 + $0x90] sm:$0xff] %v1841_v19  ;;  %v1839_v1 = vmax.f32 %v1775_v57, 0.0  ;;  %v1778_v59 = vadd.f32 %v2861_v63, %v1378_v20  ;;  %v1370_v24 = vadd.f32 %v1369_v23, %v2865_v11 }
 0x169   :  { %v1117_v27 = vpop.f32.mrf.mxu0  ;;  %v2154_v25 = vpop.f32.mrf.mxu1 }
 0x16a   :  { %1903 = vst [vmem:[%s3184_s3 + $0x80] sm:$0xff] %v1839_v1  ;;  %v1842_v28 = vmax.f32 %v1778_v59, 0.0  ;;  %v1776_v43 = vadd.f32 %v2861_v63, %v1370_v24  ;;  %v1391_v5 = vadd.f32 %v2154_v25, %v1101_v31 }
 0x16b   :  { %v1119_v32 = vpop.f32.mrf.mxu0  ;;  %v1382_v37 = vpop.f32.mrf.mxu1 }
 0x16c   :  { %1906 = vst [vmem:[%s3184_s3 + $0x98] sm:$0xff] %v1842_v28  ;;  %v1840_v35 = vmax.f32 %v1776_v43, 0.0  ;;  %v1781_v36 = vadd.f32 %v2861_v63, %v1391_v5  ;;  %v1383_v11 = vadd.f32 %v1382_v37, %v2898_v60 }
 0x16d   :  { %v1120_v39 = vpop.f32.mrf.mxu0  ;;  %v2155_v61 = vpop.f32.mrf.mxu1 }
 0x16e   :  { %1904 = vst [vmem:[%s3184_s3 + $0x88] sm:$0xff] %v1840_v35  ;;  %v1845_v29 = vmax.f32 %v1781_v36, 0.0  ;;  %v1779_v31 = vadd.f32 %v2861_v63, %v1383_v11  ;;  %v1394_v40 = vadd.f32 %v2155_v61, %v1104_v44 }
 0x16f   :  { %v1122_v47 = vpop.f32.mrf.mxu0  ;;  %v1385_v17 = vpop.f32.mrf.mxu1 }
 0x170   :  { %1909 = vst [vmem:[%s3184_s3 + $0xb0] sm:$0xff] %v1845_v29  ;;  %v1843_v49 = vmax.f32 %v1779_v31, 0.0  ;;  %v1782_v48 = vadd.f32 %v2861_v63, %v1394_v40  ;;  %v1386_v60 = vadd.f32 %v1385_v17, %v2910_v16 }
 0x171   :  { %v1125_v51 = vpop.f32.mrf.mxu0  ;;  %v2158_v52 = vpop.f32.mrf.mxu1 }
 0x172   :  { %1907 = vst [vmem:[%s3184_s3 + $0xa0] sm:$0xff] %v1843_v49  ;;  %v1846_v55 = vmax.f32 %v1782_v48, 0.0  ;;  %v1780_v44 = vadd.f32 %v2861_v63, %v1386_v60  ;;  %v1407_v41 = vadd.f32 %v2158_v52, %v1117_v27 }
 0x173   :  { %v1127_v9 = vpop.f32.mrf.mxu0  ;;  %v1398_v0 = vpop.f32.mrf.mxu1 }
 0x174   :  { %1910 = vst [vmem:[%s3184_s3 + $0xb8] sm:$0xff] %v1846_v55  ;;  %v1844_v3 = vmax.f32 %v1780_v44, 0.0  ;;  %v1785_v53 = vadd.f32 %v2861_v63, %v1407_v41  ;;  %v1399_v16 = vadd.f32 %v1398_v0, %v1109_v56 }
 0x175   :  { %v1128_v21 = vpop.f32.mrf.mxu0  ;;  %v2159_v4 = vpop.f32.mrf.mxu1 }
 0x176   :  { %1908 = vst [vmem:[%s3184_s3 + $0xa8] sm:$0xff] %v1844_v3  ;;  %v1849_v7 = vmax.f32 %v1785_v53, 0.0  ;;  %v1783_v8 = vadd.f32 %v2861_v63, %v1399_v16  ;;  %v1410_v45 = vadd.f32 %v2159_v4, %v1120_v39 }
 0x177   :  { %v1130_v12 = vpop.f32.mrf.mxu0  ;;  %v1401_v15 = vpop.f32.mrf.mxu1 }
 0x178   :  { %1913 = vst [vmem:[%s3184_s3 + $0xd0] sm:$0xff] %v1849_v7  ;;  %v1847_v19 = vmax.f32 %v1783_v8, 0.0  ;;  %v1786_v57 = vadd.f32 %v2861_v63, %v1410_v45  ;;  %v1402_v56 = vadd.f32 %v1401_v15, %v1112_v13 }
 0x179   :  { %v1133_v20 = vpop.f32.mrf.mxu0  ;;  %v2162_v33 = vpop.f32.mrf.mxu1 }
 0x17a   :  { %1911 = vst [vmem:[%s3184_s3 + $0xc0] sm:$0xff] %v1847_v19  ;;  %v1850_v23 = vmax.f32 %v1786_v57, 0.0  ;;  %v1784_v1 = vadd.f32 %v2861_v63, %v1402_v56  ;;  %v1423_v59 = vadd.f32 %v2162_v33, %v1133_v20 }
 0x17b   :  { %v1135_v24 = vpop.f32.mrf.mxu0  ;;  %v1414_v27 = vpop.f32.mrf.mxu1 }
 0x17c   :  { %1914 = vst [vmem:[%s3184_s3 + $0xd8] sm:$0xff] %v1850_v23  ;;  %v1848_v25 = vmax.f32 %v1784_v1, 0.0  ;;  %v1789_v28 = vadd.f32 %v2861_v63, %v1423_v59  ;;  %v1415_v13 = vadd.f32 %v1414_v27, %v1125_v51 }
 0x17d   :  { %v1136_v43 = vpop.f32.mrf.mxu0  ;;  %v2163_v5 = vpop.f32.mrf.mxu1 }
 0x17e   :  { %1912 = vst [vmem:[%s3184_s3 + $0xc8] sm:$0xff] %v1848_v25  ;;  %v1853_v32 = vmax.f32 %v1789_v28, 0.0  ;;  %v1787_v37 = vadd.f32 %v2861_v63, %v1415_v13  ;;  %v1426_v35 = vadd.f32 %v2163_v5, %v1136_v43 }
 0x17f   :  { %v1138_v36 = vpop.f32.mrf.mxu0  ;;  %v1417_v11 = vpop.f32.mrf.mxu1 }
 0x180   :  { %1917 = vst [vmem:[%s3184_s3 + $0xf0] sm:$0xff] %v1853_v32  ;;  %v1851_v39 = vmax.f32 %v1787_v37, 0.0  ;;  %v1790_v61 = vadd.f32 %v2861_v63, %v1426_v35  ;;  %v1418_v29 = vadd.f32 %v1417_v11, %v1128_v21 }
 0x181   :  { %v1141_v31 = vpop.f32.mrf.mxu0  ;;  %v2166_v40 = vpop.f32.mrf.mxu1 }
 0x182   :  { %1915 = vst [vmem:[%s3184_s3 + $0xe0] sm:$0xff] %v1851_v39  ;;  %v1854_v47 = vmax.f32 %v1790_v61, 0.0  ;;  %v1788_v17 = vadd.f32 %v2861_v63, %v1418_v29 }
 0x183   :  { %v1143_v49 = vpop.f32.mrf.mxu0  ;;  %v1430_v48 = vpop.f32.mrf.mxu1 }
 0x184   :  { %1918 = vst [vmem:[%s3184_s3 + $0xf8] sm:$0xff] %v1854_v47  ;;  %v1852_v60 = vmax.f32 %v1788_v17, 0.0  ;;  %v1431_v51 = vadd.f32 %v1430_v48, %v1141_v31 }
 0x185   :  { %v1144_v52 = vpop.f32.mrf.mxu0  ;;  %v2167_v55 = vpop.f32.mrf.mxu1 }
 0x186   :  { %1916 = vst [vmem:[%s3184_s3 + $0xe8] sm:$0xff] %v1852_v60  ;;  %v1791_v44 = vadd.f32 %v2861_v63, %v1431_v51 }
 0x187   :  { %v1146_v41 = vpop.f32.mrf.mxu0  ;;  %v1433_v9 = vpop.f32.mrf.mxu1 }
 0x188   :  { %v1855_v0 = vmax.f32 %v1791_v44, 0.0  ;;  %v1434_v3 = vadd.f32 %v1433_v9, %v1144_v52 }
 0x189   :  { %v1149_v53 = vpop.f32.mrf.mxu0  ;;  %v2170_v16 = vpop.f32.mrf.mxu1 }
 0x18a   :  { %1919 = vst [vmem:[%s3184_s3 + $0x100] sm:$0xff] %v1855_v0  ;;  %v1792_v21 = vadd.f32 %v2861_v63, %v1434_v3  ;;  %v1439_v4 = vadd.f32 %v2166_v40, %v1149_v53 }
 0x18b   :  { %v1151_v7 = vpop.f32.mrf.mxu0  ;;  %v1446_v8 = vpop.f32.mrf.mxu1 }
 0x18c   :  { %v1856_v45 = vmax.f32 %v1792_v21, 0.0  ;;  %v1793_v12 = vadd.f32 %v2861_v63, %v1439_v4 }
 0x18d   :  { %v1152_v15 = vpop.f32.mrf.mxu0  ;;  %v2171_v19 = vpop.f32.mrf.mxu1 }
 0x18e   :  { %1920 = vst [vmem:[%s3184_s3 + $0x108] sm:$0xff] %v1856_v45  ;;  %v1857_v57 = vmax.f32 %v1793_v12, 0.0  ;;  %v1442_v56 = vadd.f32 %v2167_v55, %v1152_v15 }
 0x18f   :  { %v1154_v20 = vpop.f32.mrf.mxu0  ;;  %v1449_v33 = vpop.f32.mrf.mxu1 }
 0x190   :  { %1921 = vst [vmem:[%s3184_s3 + $0x110] sm:$0xff] %v1857_v57  ;;  %v1794_v23 = vadd.f32 %v2861_v63, %v1442_v56 }
 0x191   :  { %v1157_v1 = vpop.f32.mrf.mxu0  ;;  %v2174_v59 = vpop.f32.mrf.mxu1 }
 0x192   :  { %v1858_v24 = vmax.f32 %v1794_v23, 0.0  ;;  %v1447_v27 = vadd.f32 %v1446_v8, %v1157_v1 }
 0x193   :  { %v1159_v25 = vpop.f32.mrf.mxu0  ;;  %v1462_v28 = vpop.f32.mrf.mxu1 }
 0x194   :  { %1922 = vst [vmem:[%s3184_s3 + $0x118] sm:$0xff] %v1858_v24  ;;  %v1795_v13 = vadd.f32 %v2861_v63, %v1447_v27 }
 0x195   :  { %v1160_v43 = vpop.f32.mrf.mxu0  ;;  %v3039_v5 = vpop.f32.mrf.mxu1 }
 0x196   :  { %v1859_v32 = vmax.f32 %v1795_v13, 0.0  ;;  %v1450_v37 = vadd.f32 %v1449_v33, %v1160_v43 }
 0x197   :  { %v1162_v35 = vpop.f32.mrf.mxu0  ;;  %v1465_v36 = vpop.f32.mrf.mxu1 }
 0x198   :  { %1923 = vst [vmem:[%s3184_s3 + $0x120] sm:$0xff] %v1859_v32  ;;  %v1796_v11 = vadd.f32 %v2861_v63, %v1450_v37 }
 0x199   :  { %v1165_v39 = vpop.f32.mrf.mxu0  ;;  %v3045_v61 = vpop.f32.mrf.mxu1 }
 0x19a   :  { %v1860_v29 = vmax.f32 %v1796_v11, 0.0  ;;  %v1455_v31 = vadd.f32 %v2170_v16, %v1165_v39 }
 0x19b   :  { %v1167_v40 = vpop.f32.mrf.mxu0  ;;  %v3047_v47 = vpop.f32.mrf.mxu1 }
 0x19c   :  { %1924 = vst [vmem:[%s3184_s3 + $0x128] sm:$0xff] %v1860_v29  ;;  %v1797_v17 = vadd.f32 %v2861_v63, %v1455_v31 }
 0x19d   :  { %v1168_v49 = vpop.f32.mrf.mxu0  ;;  %v3053_v48 = vpop.f32.mrf.mxu1 }
 0x19e   :  { %v1861_v60 = vmax.f32 %v1797_v17, 0.0  ;;  %v1458_v51 = vadd.f32 %v2171_v19, %v1168_v49 }
 0x19f   :  { %v1170_v52 = vpop.f32.mrf.mxu0  ;;  %v3055_v55 = vpop.f32.mrf.mxu1 }
 0x1a0   :  { %1925 = vst [vmem:[%s3184_s3 + $0x130] sm:$0xff] %v1861_v60  ;;  %v1798_v44 = vadd.f32 %v2861_v63, %v1458_v51 }
 0x1a1   :  { %v1173_v41 = vpop.f32.mrf.mxu0  ;;  %v2182_v9 = vpop.f32.mrf.mxu1 }
 0x1a2   :  { %v1862_v0 = vmax.f32 %v1798_v44, 0.0  ;;  %v1463_v3 = vadd.f32 %v1462_v28, %v1173_v41  ;;  %v1503_v53 = vadd.f32 %v2182_v9, %v2802_v2 }
 0x1a3   :  { %v1175_v16 = vpop.f32.mrf.mxu0  ;;  %v1494_v21 = vpop.f32.mrf.mxu1 }
 0x1a4   :  { %1926 = vst [vmem:[%s3184_s3 + $0x138] sm:$0xff] %v1862_v0  ;;  %v1799_v4 = vadd.f32 %v2861_v63, %v1463_v3  ;;  %v1809_v7 = vadd.f32 %v2861_v63, %v1503_v53  ;;  %v1495_v8 = vadd.f32 %v1494_v21, %v2796_v58 }
 0x1a5   :  { %v1176_v45 = vpop.f32.mrf.mxu0  ;;  %v2183_v12 = vpop.f32.mrf.mxu1 }
 0x1a6   :  { %v1863_v15 = vmax.f32 %v1799_v4, 0.0  ;;  %v1873_v19 = vmax.f32 %v1809_v7, 0.0  ;;  %v1807_v57 = vadd.f32 %v2861_v63, %v1495_v8  ;;  %v1466_v56 = vadd.f32 %v1465_v36, %v1176_v45 }
 0x1a7   :  { %v1506_v2 = vadd.f32 %v2183_v12, %v2806_v6  ;;  %v1178_v20 = vpop.f32.mrf.mxu0  ;;  %v1497_v33 = vpop.f32.mrf.mxu1 }
 0x1a8   :  { %1927 = vst [vmem:[%s3184_s3 + $0x140] sm:$0xff] %v1863_v15  ;;  %1937 = vst [vmem:[%s3184_s3 + $0x190] sm:$0xff] %v1873_v19  ;;  %v1871_v58 = vmax.f32 %v1807_v57, 0.0  ;;  %v1800_v23 = vadd.f32 %v2861_v63, %v1466_v56  ;;  %v1498_v1 = vadd.f32 %v1497_v33, %v2800_v62 }
 0x1a9   :  { %v1810_v24 = vadd.f32 %v2861_v63, %v1506_v2  ;;  %v1181_v27 = vpop.f32.mrf.mxu0  ;;  %v2186_v25 = vpop.f32.mrf.mxu1 }
 0x1aa   :  { %1935 = vst [vmem:[%s3184_s3 + $0x180] sm:$0xff] %v1871_v58  ;;  %v1864_v6 = vmax.f32 %v1800_v23, 0.0  ;;  %v1808_v28 = vadd.f32 %v2861_v63, %v1498_v1  ;;  %v1471_v13 = vadd.f32 %v2174_v59, %v1181_v27  ;;  %v1519_v43 = vadd.f32 %v2186_v25, %v2818_v18 }
 0x1ab   :  { %v1874_v32 = vmax.f32 %v1810_v24, 0.0  ;;  %v1183_v37 = vpop.f32.mrf.mxu0  ;;  %v1510_v35 = vpop.f32.mrf.mxu1 }
 0x1ac   :  { %1928 = vst [vmem:[%s3184_s3 + $0x148] sm:$0xff] %v1864_v6  ;;  %v1872_v62 = vmax.f32 %v1808_v28, 0.0  ;;  %v1801_v36 = vadd.f32 %v2861_v63, %v1471_v13  ;;  %v1813_v11 = vadd.f32 %v2861_v63, %v1519_v43  ;;  %v1511_v39 = vadd.f32 %v1510_v35, %v2810_v10 }
 0x1ad   :  { %1938 = vst [vmem:[%s3184_s3 + $0x198] sm:$0xff] %v1874_v32  ;;  %v1184_v59 = vpop.f32.mrf.mxu0  ;;  %v2187_v18 = vpop.f32.mrf.mxu1 }
 0x1ae   :  { %1936 = vst [vmem:[%s3184_s3 + $0x188] sm:$0xff] %v1872_v62  ;;  %v1865_v29 = vmax.f32 %v1801_v36, 0.0  ;;  %v1877_v31 = vmax.f32 %v1813_v11, 0.0  ;;  %v1811_v40 = vadd.f32 %v2861_v63, %v1511_v39  ;;  %v1474_v17 = vadd.f32 %v3039_v5, %v1184_v59 }
 0x1af   :  { %v1522_v49 = vadd.f32 %v2187_v18, %v2822_v22  ;;  %v1186_v60 = vpop.f32.mrf.mxu0  ;;  %v1513_v10 = vpop.f32.mrf.mxu1 }
 0x1b0   :  { %1929 = vst [vmem:[%s3184_s3 + $0x150] sm:$0xff] %v1865_v29  ;;  %1941 = vst [vmem:[%s3184_s3 + $0x1b0] sm:$0xff] %v1877_v31  ;;  %v1875_v51 = vmax.f32 %v1811_v40, 0.0  ;;  %v1802_v52 = vadd.f32 %v2861_v63, %v1474_v17  ;;  %v1514_v44 = vadd.f32 %v1513_v10, %v2814_v14 }
 0x1b1   :  { %v1814_v41 = vadd.f32 %v2861_v63, %v1522_v49  ;;  %v1189_v5 = vpop.f32.mrf.mxu0  ;;  %v2190_v9 = vpop.f32.mrf.mxu1 }
 0x1b2   :  { %1939 = vst [vmem:[%s3184_s3 + $0x1a0] sm:$0xff] %v1875_v51  ;;  %v1866_v22 = vmax.f32 %v1802_v52, 0.0  ;;  %v1812_v0 = vadd.f32 %v2861_v63, %v1514_v44  ;;  %v1479_v3 = vadd.f32 %v3047_v47, %v1189_v5  ;;  %v1535_v53 = vadd.f32 %v2190_v9, %v2834_v34 }
 0x1b3   :  { %v1878_v16 = vmax.f32 %v1814_v41, 0.0  ;;  %v1191_v21 = vpop.f32.mrf.mxu0  ;;  %v1526_v4 = vpop.f32.mrf.mxu1 }
 0x1b4   :  { %1930 = vst [vmem:[%s3184_s3 + $0x158] sm:$0xff] %v1866_v22  ;;  %v1876_v14 = vmax.f32 %v1812_v0, 0.0  ;;  %v1803_v7 = vadd.f32 %v2861_v63, %v1479_v3  ;;  %v1817_v8 = vadd.f32 %v2861_v63, %v1535_v53  ;;  %v1527_v45 = vadd.f32 %v1526_v4, %v2826_v26 }
 0x1b5   :  { %1942 = vst [vmem:[%s3184_s3 + $0x1b8] sm:$0xff] %v1878_v16  ;;  %v1192_v47 = vpop.f32.mrf.mxu0  ;;  %v2191_v34 = vpop.f32.mrf.mxu1 }
 0x1b6   :  { %1940 = vst [vmem:[%s3184_s3 + $0x1a8] sm:$0xff] %v1876_v14  ;;  %v1867_v12 = vmax.f32 %v1803_v7, 0.0  ;;  %v1881_v15 = vmax.f32 %v1817_v8, 0.0  ;;  %v1815_v19 = vadd.f32 %v2861_v63, %v1527_v45  ;;  %v1482_v57 = vadd.f32 %v3055_v55, %v1192_v47 }
 0x1b7   :  { %v1538_v56 = vadd.f32 %v2191_v34, %v2838_v38  ;;  %v1194_v2 = vpop.f32.mrf.mxu0  ;;  %v1529_v26 = vpop.f32.mrf.mxu1 }
 0x1b8   :  { %1931 = vst [vmem:[%s3184_s3 + $0x160] sm:$0xff] %v1867_v12  ;;  %1945 = vst [vmem:[%s3184_s3 + $0x1d0] sm:$0xff] %v1881_v15  ;;  %v1879_v20 = vmax.f32 %v1815_v19, 0.0  ;;  %v1804_v33 = vadd.f32 %v2861_v63, %v1482_v57  ;;  %v1530_v58 = vadd.f32 %v1529_v26, %v2830_v30 }
 0x1b9   :  { %v1818_v23 = vadd.f32 %v2861_v63, %v1538_v56  ;;  %v1197_v55 = vpop.f32.mrf.mxu0  ;;  %v2194_v1 = vpop.f32.mrf.mxu1 }
 0x1ba   :  { %1943 = vst [vmem:[%s3184_s3 + $0x1c0] sm:$0xff] %v1879_v20  ;;  %v1868_v38 = vmax.f32 %v1804_v33, 0.0  ;;  %v1816_v24 = vadd.f32 %v2861_v63, %v1530_v58  ;;  %v1487_v27 = vadd.f32 %v3045_v61, %v1197_v55  ;;  %v1551_v25 = vadd.f32 %v2194_v1, %v2850_v50 }
 0x1bb   :  { %v1882_v6 = vmax.f32 %v1818_v23, 0.0  ;;  %v1199_v28 = vpop.f32.mrf.mxu0  ;;  %v1542_v13 = vpop.f32.mrf.mxu1 }
 0x1bc   :  { %1932 = vst [vmem:[%s3184_s3 + $0x168] sm:$0xff] %v1868_v38  ;;  %v1880_v30 = vmax.f32 %v1816_v24, 0.0  ;;  %v1805_v43 = vadd.f32 %v2861_v63, %v1487_v27  ;;  %v1821_v32 = vadd.f32 %v2861_v63, %v1551_v25  ;;  %v1543_v37 = vadd.f32 %v1542_v13, %v2842_v42 }
 0x1bd   :  { %1946 = vst [vmem:[%s3184_s3 + $0x1d8] sm:$0xff] %v1882_v6  ;;  %v1200_v61 = vpop.f32.mrf.mxu0  ;;  %v2195_v50 = vpop.f32.mrf.mxu1 }
 0x1be   :  { %1944 = vst [vmem:[%s3184_s3 + $0x1c8] sm:$0xff] %v1880_v30  ;;  %v1869_v35 = vmax.f32 %v1805_v43, 0.0  ;;  %v1885_v62 = vmax.f32 %v1821_v32, 0.0  ;;  %v1819_v36 = vadd.f32 %v2861_v63, %v1543_v37  ;;  %v1490_v11 = vadd.f32 %v3053_v48, %v1200_v61 }
 0x1bf   :  { %v1554_v39 = vadd.f32 %v2195_v50, %v2854_v54  ;;  %v1202_v59 = vpop.f32.mrf.mxu0  ;;  %v1545_v42 = vpop.f32.mrf.mxu1 }
 0x1c0   :  { %1933 = vst [vmem:[%s3184_s3 + $0x170] sm:$0xff] %v1869_v35  ;;  %1949 = vst [vmem:[%s3184_s3 + $0x1f0] sm:$0xff] %v1885_v62  ;;  %v1883_v18 = vmax.f32 %v1819_v36, 0.0  ;;  %v1806_v29 = vadd.f32 %v2861_v63, %v1490_v11  ;;  %v1546_v31 = vadd.f32 %v1545_v42, %v2846_v46 }
 0x1c1   :  { %v1822_v40 = vadd.f32 %v2861_v63, %v1554_v39 }
 0x1c2   :  { %1947 = vst [vmem:[%s3184_s3 + $0x1e0] sm:$0xff] %v1883_v18  ;;  %v1870_v54 = vmax.f32 %v1806_v29, 0.0  ;;  %v1820_v48 = vadd.f32 %v2861_v63, %v1546_v31 }
 0x1c3   :  { %v1886_v17 = vmax.f32 %v1822_v40, 0.0 }
 0x1c4   :  { %1934 = vst [vmem:[%s3184_s3 + $0x178] sm:$0xff] %v1870_v54  ;;  %v1884_v49 = vmax.f32 %v1820_v48, 0.0 }
 0x1c5   :  { %1950 = vst [vmem:[%s3184_s3 + $0x1f8] sm:$0xff] %v1886_v17 }
 0x1c6   :  { %1948 = vst [vmem:[%s3184_s3 + $0x1e8] sm:$0xff] %v1884_v49 }

</bundles_post_ra>
